<compile_context>
chip_gen: v7x
topology: tpu7x:2x2x1
jax: 0.10.0
libtpu: 0.0.40
codegen_flags: <defaults>
</compile_context>

<pallas_src>
import functools

import jax
import jax.numpy as jnp
from jax.experimental import pallas as pl
from jax.experimental.pallas import tpu as pltpu

LATENT_DIM = 100
OUT_DIM = 784
DIMS = [LATENT_DIM, 128, 256, 512, OUT_DIM]
PAD_LATENT = 128  # latent 100 -> 128 so the first matmul's K dim is lane-dense


def _round_up(x, m):
    return (x + m - 1) // m * m


def _tensorcores_per_chip():
    """Best-effort TensorCore count (grid steps to feed for megacore)."""
    try:
        kind = (jax.devices()[0].device_kind or "").lower()
    except Exception:
        return 1
    # v7x has 2 TCs per chip; v4/v5p megacore also expose 2 TCs to Pallas
    # "parallel" grid sharding.  v5e/v6e are single-TC.
    if any(tag in kind for tag in ("v7", "7x", "v4", "v5p")):
        return 2
    return 1


def generator_kernel(x_ref,
                     w1_ref, b1_ref,
                     w2_ref, b2_ref,
                     w3_ref, b3_ref,
                     w4_ref, b4_ref,
                     o_ref):
    """Fused 4-layer MLP: (Linear+ReLU)x3 -> Linear -> Tanh for one batch tile.

    x_ref and w*_ref are bf16 (MXU operands, f32 accumulation); biases and all
    elementwise math (bias add / ReLU / tanh) are f32.  Output is stored in
    o_ref.dtype (bf16 by default).
    """
    h = jnp.dot(x_ref[...], w1_ref[...],
                preferred_element_type=jnp.float32) + b1_ref[...]
    h = jnp.maximum(h, 0.0).astype(jnp.bfloat16)                  # ReLU

    h = jnp.dot(h, w2_ref[...],
                preferred_element_type=jnp.float32) + b2_ref[...]
    h = jnp.maximum(h, 0.0).astype(jnp.bfloat16)                  # ReLU

    h = jnp.dot(h, w3_ref[...],
                preferred_element_type=jnp.float32) + b3_ref[...]
    h = jnp.maximum(h, 0.0).astype(jnp.bfloat16)                  # ReLU

    h = jnp.dot(h, w4_ref[...],
                preferred_element_type=jnp.float32) + b4_ref[...]
    o_ref[...] = jnp.tanh(h).astype(o_ref.dtype)                  # Tanh


def prepare_params(params):
    """One-time weight prep: pad latent K dim (100->128), cast W to bf16.

    params: list of (W_(in,out) f32, b_(1,out) f32) from init_params.
    Returns a flat tuple consumed by generator_forward.
    """
    (w1, b1), (w2, b2), (w3, b3), (w4, b4) = params
    w1_p = jnp.pad(w1, ((0, PAD_LATENT - w1.shape[0]), (0, 0))).astype(jnp.bfloat16)
    w2_p = w2.astype(jnp.bfloat16)
    w3_p = w3.astype(jnp.bfloat16)
    w4_p = w4.astype(jnp.bfloat16)
    b1_p = b1.astype(jnp.float32).reshape(1, -1)
    b2_p = b2.astype(jnp.float32).reshape(1, -1)
    b3_p = b3.astype(jnp.float32).reshape(1, -1)
    b4_p = b4.astype(jnp.float32).reshape(1, -1)
    return (w1_p, b1_p, w2_p, b2_p, w3_p, b3_p, w4_p, b4_p)


@functools.partial(jax.jit, static_argnames=("block_b", "out_dtype"))
def generator_forward(x, prepared, block_b=512, out_dtype=jnp.bfloat16):
    """x: (B, 100) float32. prepared: output of prepare_params."""
    w1, b1, w2, b2, w3, b3, w4, b4 = prepared
    B = x.shape[0]
    num_cores = _tensorcores_per_chip()

    # Batch tile: multiple of 16 (bf16 sublane packing), capped at block_b and
    # the padded batch.
    bb = min(block_b, _round_up(max(B, 16), 16))
    bb = max(16, _round_up(bb, 16))
    B_pad = _round_up(B, bb)
    # Multi-TC chips (v7x, v4/v5p megacore): ensure at least num_cores parallel
    # grid steps so both TensorCores get work.  Single-TC v5e/v6e keep one big
    # step (avoids extra per-step overhead and a second weight staging pass).
    if num_cores > 1:
        while B_pad // bb < num_cores and bb > 16:
            bb = max(16, _round_up(bb // 2, 16))
            B_pad = _round_up(B, bb)
    grid = (B_pad // bb,)

    # Zero-pad batch + latent K dim, cast the MXU operand to bf16.
    x_p = jnp.pad(x, ((0, B_pad - B), (0, PAD_LATENT - LATENT_DIM))).astype(jnp.bfloat16)

    def resident(a):
        # Grid-invariant block: whole array VMEM-resident every step.
        return pl.BlockSpec(a.shape, lambda i: (0, 0))

    in_specs = [
        pl.BlockSpec((bb, PAD_LATENT), lambda i: (i, 0)),   # x tile over batch
        resident(w1), resident(b1),
        resident(w2), resident(b2),
        resident(w3), resident(b3),
        resident(w4), resident(b4),
    ]
    # Output block is the full 784-wide row (last dim == full array dim, so the
    # (8,128) rule is satisfied; only one masked tail vreg per sublane row).
    out_spec = pl.BlockSpec((bb, OUT_DIM), lambda i: (i, 0))

    flops = 2 * B_pad * (PAD_LATENT * 128 + 128 * 256 + 256 * 512 + 512 * OUT_DIM)
    w_bytes = sum(int(a.size) * 2 for a in (w1, w2, w3, w4))
    b_bytes = sum(int(a.size) * 4 for a in (b1, b2, b3, b4))
    out_bytes = B_pad * OUT_DIM * jnp.dtype(out_dtype).itemsize
    bytes_accessed = int(x_p.size) * 2 + out_bytes + w_bytes + b_bytes

    out = pl.pallas_call(
        generator_kernel,
        out_shape=jax.ShapeDtypeStruct((B_pad, OUT_DIM), out_dtype),
        grid=grid,
        in_specs=in_specs,
        out_specs=out_spec,
        compiler_params=pltpu.CompilerParams(
            dimension_semantics=("parallel",),
            # Working set at bb=512: ~1.3 MiB bf16 weights (x2 buffered),
            # ~2 MiB x/out tiles (x2 buffered), a few MiB f32 intermediates
            # -> well under 40 MiB, which also leaves headroom on v7x's
            # 64 MiB physical VMEM per TC.
            vmem_limit_bytes=40 * 1024 * 1024,
        ),
        cost_estimate=pl.CostEstimate(
            flops=flops,
            transcendentals=B_pad * OUT_DIM,
            bytes_accessed=bytes_accessed,
        ),
    )(x_p, w1, b1, w2, b2, w3, b3, w4, b4)

    # Strip only padded batch rows (no column depad copy needed anymore).
    return out[:B]


def init_params(key):
    """Deterministic synthetic init matching nn.Linear shapes.

    PyTorch stores W as (out, in); we generate that shape then transpose to
    (in, out) for the kernel's `x @ W` convention.
    """
    params = []
    for fan_in, fan_out in zip(DIMS[:-1], DIMS[1:]):
        key, kw, kb = jax.random.split(key, 3)
        bound = 1.0 / (fan_in ** 0.5)
        w_torch = jax.random.uniform(kw, (fan_out, fan_in), jnp.float32,
                                     minval=-bound, maxval=bound)
        b = jax.random.uniform(kb, (fan_out,), jnp.float32,
                               minval=-bound, maxval=bound)
        params.append((w_torch.T, b.reshape(1, fan_out)))
    return params


def reference_forward_f32(x, params):
    h = x
    for i, (w, b) in enumerate(params):
        h = h @ w + b
        h = jnp.maximum(h, 0.0) if i < len(params) - 1 else jnp.tanh(h)
    return h


def reference_forward_bf16(x, params):
    """Pure-JAX reference using the same mixed precision as the kernel."""
    h = x.astype(jnp.bfloat16)
    for i, (w, b) in enumerate(params):
        h = jnp.dot(h, w.astype(jnp.bfloat16),
                    preferred_element_type=jnp.float32) + b
        if i < len(params) - 1:
            h = jnp.maximum(h, 0.0).astype(jnp.bfloat16)
        else:
            h = jnp.tanh(h)
    return h


if __name__ == "__main__":
    key = jax.random.PRNGKey(0)
    key, kx, kx2 = jax.random.split(key, 3)

    params = init_params(key)
    prepared = prepare_params(params)  # one-time pad + bf16 cast

    # --- Small batch (single tile) ---
    batch = 8
    x = jax.random.normal(kx, (batch, LATENT_DIM), jnp.float32)
    out = jax.block_until_ready(generator_forward(x, prepared))
    assert out.shape == (batch, OUT_DIM), out.shape

    out_f32 = out.astype(jnp.float32)
    ref_bf16 = reference_forward_bf16(x, params)   # matches kernel precision
    ref_f32 = reference_forward_f32(x, params)     # original f32 semantics
    assert jnp.allclose(out_f32, ref_bf16, atol=2e-2, rtol=2e-2), \
        float(jnp.max(jnp.abs(out_f32 - ref_bf16)))
    assert jnp.allclose(out_f32, ref_f32, atol=1e-1, rtol=1e-1), \
        float(jnp.max(jnp.abs(out_f32 - ref_f32)))

    # --- Multi-step grid with padded (stripped) batch rows ---
    batch2 = 200
    x2 = jax.random.normal(kx2, (batch2, LATENT_DIM), jnp.float32)
    out2 = jax.block_until_ready(generator_forward(x2, prepared, block_b=64))
    assert out2.shape == (batch2, OUT_DIM), out2.shape
    ref2 = reference_forward_bf16(x2, params)
    assert jnp.allclose(out2.astype(jnp.float32), ref2, atol=2e-2, rtol=2e-2), \
        float(jnp.max(jnp.abs(out2.astype(jnp.float32) - ref2)))

    print("KERNEL_OK")
</pallas_src>

<mosaic_0001>
module attributes {stable_mosaic.version = 11 : i64} {
  func.func @generator_kernel(%arg0: i32, %arg1: memref<16x128xbf16, #tpu.memory_space<vmem>>, %arg2: memref<128x128xbf16, #tpu.memory_space<vmem>>, %arg3: memref<1x128xf32, #tpu.memory_space<vmem>>, %arg4: memref<128x256xbf16, #tpu.memory_space<vmem>>, %arg5: memref<1x256xf32, #tpu.memory_space<vmem>>, %arg6: memref<256x512xbf16, #tpu.memory_space<vmem>>, %arg7: memref<1x512xf32, #tpu.memory_space<vmem>>, %arg8: memref<512x784xbf16, #tpu.memory_space<vmem>>, %arg9: memref<1x784xf32, #tpu.memory_space<vmem>>, %arg10: memref<16x784xbf16, #tpu.memory_space<vmem>>) attributes {dimension_semantics = [#tpu.dimension_semantics<parallel>], iteration_bounds = array<i64: 1>, scalar_prefetch = 0 : i64, scratch_operands = 0 : i64, tpu.core_type = #tpu.core_type<tc>, window_params = [{transform_indices = @transform_0, window_bounds = array<i64: 16, 128>}, {pipeline_mode = #tpu.pipeline_mode<synchronous>, transform_indices = @transform_1, window_bounds = array<i64: 128, 128>}, {pipeline_mode = #tpu.pipeline_mode<synchronous>, transform_indices = @transform_2, window_bounds = array<i64: 1, 128>}, {pipeline_mode = #tpu.pipeline_mode<synchronous>, transform_indices = @transform_3, window_bounds = array<i64: 128, 256>}, {pipeline_mode = #tpu.pipeline_mode<synchronous>, transform_indices = @transform_4, window_bounds = array<i64: 1, 256>}, {pipeline_mode = #tpu.pipeline_mode<synchronous>, transform_indices = @transform_5, window_bounds = array<i64: 256, 512>}, {pipeline_mode = #tpu.pipeline_mode<synchronous>, transform_indices = @transform_6, window_bounds = array<i64: 1, 512>}, {pipeline_mode = #tpu.pipeline_mode<synchronous>, transform_indices = @transform_7, window_bounds = array<i64: 512, 784>}, {pipeline_mode = #tpu.pipeline_mode<synchronous>, transform_indices = @transform_8, window_bounds = array<i64: 1, 784>}, {transform_indices = @transform_9, window_bounds = array<i64: 16, 784>}]} {
    %c0 = arith.constant 0 : index
    %c0_0 = arith.constant 0 : index
    %0 = vector.load %arg1[%c0, %c0_0] : memref<16x128xbf16, #tpu.memory_space<vmem>>, vector<16x128xbf16>
    %c0_1 = arith.constant 0 : index
    %c0_2 = arith.constant 0 : index
    %1 = vector.load %arg2[%c0_1, %c0_2] : memref<128x128xbf16, #tpu.memory_space<vmem>>, vector<128x128xbf16>
    %cst = arith.constant dense<0.000000e+00> : vector<16x128xf32>
    %2 = tpu.matmul %0, %1, %cst {dimension_numbers = #tpu.dot_dimension_numbers<[1], [0], [0], [1], [0, 0, 1, 1], [], []>} : vector<16x128xbf16>, vector<128x128xbf16>, vector<16x128xf32> -> vector<16x128xf32>
    %c0_3 = arith.constant 0 : index
    %c0_4 = arith.constant 0 : index
    %3 = vector.load %arg3[%c0_3, %c0_4] : memref<1x128xf32, #tpu.memory_space<vmem>>, vector<1x128xf32>
    %4 = vector.broadcast %3 : vector<1x128xf32> to vector<16x128xf32>
    %5 = arith.addf %2, %4 : vector<16x128xf32>
    %cst_5 = arith.constant 0.000000e+00 : f32
    %6 = vector.broadcast %cst_5 : f32 to vector<16x128xf32>
    %7 = arith.maximumf %5, %6 : vector<16x128xf32>
    %8 = arith.truncf %7 : vector<16x128xf32> to vector<16x128xbf16>
    %c0_6 = arith.constant 0 : index
    %c0_7 = arith.constant 0 : index
    %9 = vector.load %arg4[%c0_6, %c0_7] : memref<128x256xbf16, #tpu.memory_space<vmem>>, vector<128x256xbf16>
    %cst_8 = arith.constant dense<0.000000e+00> : vector<16x256xf32>
    %10 = tpu.matmul %8, %9, %cst_8 {dimension_numbers = #tpu.dot_dimension_numbers<[1], [0], [0], [1], [0, 0, 1, 1], [], []>} : vector<16x128xbf16>, vector<128x256xbf16>, vector<16x256xf32> -> vector<16x256xf32>
    %c0_9 = arith.constant 0 : index
    %c0_10 = arith.constant 0 : index
    %11 = vector.load %arg5[%c0_9, %c0_10] : memref<1x256xf32, #tpu.memory_space<vmem>>, vector<1x256xf32>
    %12 = vector.broadcast %11 : vector<1x256xf32> to vector<16x256xf32>
    %13 = arith.addf %10, %12 : vector<16x256xf32>
    %cst_11 = arith.constant 0.000000e+00 : f32
    %14 = vector.broadcast %cst_11 : f32 to vector<16x256xf32>
    %15 = arith.maximumf %13, %14 : vector<16x256xf32>
    %16 = arith.truncf %15 : vector<16x256xf32> to vector<16x256xbf16>
    %c0_12 = arith.constant 0 : index
    %c0_13 = arith.constant 0 : index
    %17 = vector.load %arg6[%c0_12, %c0_13] : memref<256x512xbf16, #tpu.memory_space<vmem>>, vector<256x512xbf16>
    %cst_14 = arith.constant dense<0.000000e+00> : vector<16x512xf32>
    %18 = tpu.matmul %16, %17, %cst_14 {dimension_numbers = #tpu.dot_dimension_numbers<[1], [0], [0], [1], [0, 0, 1, 1], [], []>} : vector<16x256xbf16>, vector<256x512xbf16>, vector<16x512xf32> -> vector<16x512xf32>
    %c0_15 = arith.constant 0 : index
    %c0_16 = arith.constant 0 : index
    %19 = vector.load %arg7[%c0_15, %c0_16] : memref<1x512xf32, #tpu.memory_space<vmem>>, vector<1x512xf32>
    %20 = vector.broadcast %19 : vector<1x512xf32> to vector<16x512xf32>
    %21 = arith.addf %18, %20 : vector<16x512xf32>
    %cst_17 = arith.constant 0.000000e+00 : f32
    %22 = vector.broadcast %cst_17 : f32 to vector<16x512xf32>
    %23 = arith.maximumf %21, %22 : vector<16x512xf32>
    %24 = arith.truncf %23 : vector<16x512xf32> to vector<16x512xbf16>
    %c0_18 = arith.constant 0 : index
    %c0_19 = arith.constant 0 : index
    %25 = vector.load %arg8[%c0_18, %c0_19] : memref<512x784xbf16, #tpu.memory_space<vmem>>, vector<512x784xbf16>
    %cst_20 = arith.constant dense<0.000000e+00> : vector<16x784xf32>
    %26 = tpu.matmul %24, %25, %cst_20 {dimension_numbers = #tpu.dot_dimension_numbers<[1], [0], [0], [1], [0, 0, 1, 1], [], []>} : vector<16x512xbf16>, vector<512x784xbf16>, vector<16x784xf32> -> vector<16x784xf32>
    %c0_21 = arith.constant 0 : index
    %c0_22 = arith.constant 0 : index
    %27 = vector.load %arg9[%c0_21, %c0_22] : memref<1x784xf32, #tpu.memory_space<vmem>>, vector<1x784xf32>
    %28 = vector.broadcast %27 : vector<1x784xf32> to vector<16x784xf32>
    %29 = arith.addf %26, %28 : vector<16x784xf32>
    %30 = math.tanh %29 : vector<16x784xf32>
    %31 = arith.truncf %30 : vector<16x784xf32> to vector<16x784xbf16>
    %c0_23 = arith.constant 0 : index
    %c0_24 = arith.constant 0 : index
    %32 = vector.load %arg10[%c0_23, %c0_24] : memref<16x784xbf16, #tpu.memory_space<vmem>>, vector<16x784xbf16>
    tpu.vector_store %arg10[%c0_23, %c0_24], %31 {strides = array<i32>} : memref<16x784xbf16, #tpu.memory_space<vmem>>, vector<16x784xbf16>,
    return
  }
  func.func @transform_0(%arg0: i32) -> (i32, i32) {
    %c0_i32 = arith.constant 0 : i32
    %c0_i32_0 = arith.constant 0 : i32
    return %arg0, %c0_i32 : i32, i32
  }
  func.func @transform_1(%arg0: i32) -> (i32, i32) {
    %c0_i32 = arith.constant 0 : i32
    %c0_i32_0 = arith.constant 0 : i32
    %c0_i32_1 = arith.constant 0 : i32
    return %c0_i32, %c0_i32_0 : i32, i32
  }
  func.func @transform_2(%arg0: i32) -> (i32, i32) {
    %c0_i32 = arith.constant 0 : i32
    %c0_i32_0 = arith.constant 0 : i32
    %c0_i32_1 = arith.constant 0 : i32
    return %c0_i32, %c0_i32_0 : i32, i32
  }
  func.func @transform_3(%arg0: i32) -> (i32, i32) {
    %c0_i32 = arith.constant 0 : i32
    %c0_i32_0 = arith.constant 0 : i32
    %c0_i32_1 = arith.constant 0 : i32
    return %c0_i32, %c0_i32_0 : i32, i32
  }
  func.func @transform_4(%arg0: i32) -> (i32, i32) {
    %c0_i32 = arith.constant 0 : i32
    %c0_i32_0 = arith.constant 0 : i32
    %c0_i32_1 = arith.constant 0 : i32
    return %c0_i32, %c0_i32_0 : i32, i32
  }
  func.func @transform_5(%arg0: i32) -> (i32, i32) {
    %c0_i32 = arith.constant 0 : i32
    %c0_i32_0 = arith.constant 0 : i32
    %c0_i32_1 = arith.constant 0 : i32
    return %c0_i32, %c0_i32_0 : i32, i32
  }
  func.func @transform_6(%arg0: i32) -> (i32, i32) {
    %c0_i32 = arith.constant 0 : i32
    %c0_i32_0 = arith.constant 0 : i32
    %c0_i32_1 = arith.constant 0 : i32
    return %c0_i32, %c0_i32_0 : i32, i32
  }
  func.func @transform_7(%arg0: i32) -> (i32, i32) {
    %c0_i32 = arith.constant 0 : i32
    %c0_i32_0 = arith.constant 0 : i32
    %c0_i32_1 = arith.constant 0 : i32
    return %c0_i32, %c0_i32_0 : i32, i32
  }
  func.func @transform_8(%arg0: i32) -> (i32, i32) {
    %c0_i32 = arith.constant 0 : i32
    %c0_i32_0 = arith.constant 0 : i32
    %c0_i32_1 = arith.constant 0 : i32
    return %c0_i32, %c0_i32_0 : i32, i32
  }
  func.func @transform_9(%arg0: i32) -> (i32, i32) {
    %c0_i32 = arith.constant 0 : i32
    %c0_i32_0 = arith.constant 0 : i32
    return %arg0, %c0_i32 : i32, i32
  }
}

</mosaic_0001>

<bundles_post_ra>
// kernel: generator_forward.1
= control target key start
LH: loop header
LB: loop body
LE: loop exit
PB: predicated region body
PF: predicated region fallthrough
CT: control target
= control target key end

     0   :  { %v3580_v0 = vmov 0.0   ;;  %vm3581_vm0 = vmmov 0   ;;  %v3582_v26 = vmov 0   ;;  %vm2663_vm1 = vcmask 125952   ;;  %s4668_s1 = inlined_call_operand.vmem [shape: bf16[128,128], index: 1, kind: input, shape index: {}]   ;;  %s4669_s0 = inlined_call_operand.vmem [shape: bf16[16,128], index: 0, kind: input, shape index: {}]   ;;  %s4670_s3 = inlined_call_operand.vmem [shape: bf16[128,256], index: 3, kind: input, shape index: {}]   ;;  %s4671_s5 = inlined_call_operand.vmem [shape: bf16[256,512], index: 5, kind: input, shape index: {}]   ;;  %s4672_s2 = inlined_call_operand.vmem [shape: f32[1,128], index: 2, kind: input, shape index: {}]   ;;  %s4673_s7 = inlined_call_operand.vmem [shape: bf16[512,784], index: 7, kind: input, shape index: {}]   ;;  %s4674_s4 = inlined_call_operand.vmem [shape: f32[1,256], index: 4, kind: input, shape index: {}]   ;;  %s4675_s6 = inlined_call_operand.vmem [shape: f32[1,512], index: 6, kind: input, shape index: {}]   ;;  %s4676_s8 = inlined_call_operand.vmem [shape: f32[1,784], index: 8, kind: input, shape index: {}]   ;;  %s4677_s9 = inlined_call_operand.vmem [shape: bf16[16,784], index: 9, kind: output, shape index: {}]  }
   0x1   :  { %3056 = vmatprep.subr.bf16.mxu1 %v3580_v0  ;;  %v3103_v1 = vld [vmem:[%s4668_s1] sm:$0xff]   ;;  %3072 = vmatprep.mubr.msk.bf16.mxu1 %vm3581_vm0, %v3580_v0  ;;  %v3104_v2 = vld [vmem:[%s4668_s1 + $0x8] sm:$0xff]   ;;  %v3105_v3 = vld [vmem:[%s4668_s1 + $0x10] sm:$0xff]  }
   0x2   :  { %3057 = vmatpush3.bf16.msra.mxu1 %v3103_v1  ;;  %v3106_v4 = vld [vmem:[%s4668_s1 + $0x18] sm:$0xff]   ;;  %v3107_v5 = vld [vmem:[%s4668_s1 + $0x20] sm:$0xff]   ;;  %v3108_v6 = vld [vmem:[%s4668_s1 + $0x28] sm:$0xff]  }
   0x3   :  { %3058 = vmatprep.subr.bf16.mxu1 %v3580_v0  ;;  %v3109_v7 = vld [vmem:[%s4668_s1 + $0x30] sm:$0xff]   ;;  %v3110_v8 = vld [vmem:[%s4668_s1 + $0x38] sm:$0xff]   ;;  %v3114_v9 = vld [vmem:[%s4670_s3 + $0x4] ss:$8 sps:$4 sm:$0xff]  }
   0x4   :  { %v3111_v10 = vld [vmem:[%s4669_s0] sm:$0xff]   ;;  %v3117_v12 = vld [vmem:[%s4670_s3 + $0x14] ss:$8 sps:$4 sm:$0xff]   ;;  %v3115_v13 = vld [vmem:[%s4670_s3 + $0x10] ss:$8 sps:$4 sm:$0xff]  }
   0x5   :  { %v3112_v11 = vld [vmem:[%s4670_s3] ss:$8 sps:$4 sm:$0xff]   ;;  %v3120_v14 = vld [vmem:[%s4670_s3 + $0x24] ss:$8 sps:$4 sm:$0xff]   ;;  %v3123_v16 = vld [vmem:[%s4670_s3 + $0x34] ss:$8 sps:$4 sm:$0xff]  }
   0x6   :  { %3059 = vmatpush3.bf16.msra.mxu1 %v3104_v2  ;;  %v3118_v15 = vld [vmem:[%s4670_s3 + $0x20] ss:$8 sps:$4 sm:$0xff]   ;;  %v3121_v17 = vld [vmem:[%s4670_s3 + $0x30] ss:$8 sps:$4 sm:$0xff]   ;;  %v3126_v18 = vld [vmem:[%s4670_s3 + $0x44] ss:$8 sps:$4 sm:$0xff]  }
   0x7   :  { %3060 = vmatprep.subr.bf16.mxu1 %v3580_v0  ;;  %v3124_v19 = vld [vmem:[%s4670_s3 + $0x40] ss:$8 sps:$4 sm:$0xff]   ;;  %v3129_v20 = vld [vmem:[%s4670_s3 + $0x54] ss:$8 sps:$4 sm:$0xff]   ;;  %v3127_v21 = vld [vmem:[%s4670_s3 + $0x50] ss:$8 sps:$4 sm:$0xff]  }
   0x8   :  { %v3132_v22 = vld [vmem:[%s4670_s3 + $0x64] ss:$8 sps:$4 sm:$0xff]   ;;  %v3130_v23 = vld [vmem:[%s4670_s3 + $0x60] ss:$8 sps:$4 sm:$0xff]   ;;  %v3135_v24 = vld [vmem:[%s4670_s3 + $0x74] ss:$8 sps:$4 sm:$0xff]  }
   0x9   :  { %v3133_v25 = vld [vmem:[%s4670_s3 + $0x70] ss:$8 sps:$4 sm:$0xff]   ;;  %v3136_v27 = vld [vmem:[%s4671_s5 + $0x4] ss:$16 sps:$4 sm:$0xff]   ;;  %v3140_v28 = vld [vmem:[%s4671_s5 + $0xc] ss:$16 sps:$4 sm:$0xff]  }
   0xa   :  { %3061 = vmatpush3.bf16.msra.mxu1 %v3105_v3  ;;  %719 = vmatprep.subr.bf16.mxu0 %v3136_v27  ;;  %v3141_v29 = vld [vmem:[%s4671_s5] ss:$16 sps:$4 sm:$0xff]   ;;  %v3142_v30 = vld [vmem:[%s4671_s5 + $0x24] ss:$16 sps:$4 sm:$0xff]   ;;  %v3146_v2 = vld [vmem:[%s4671_s5 + $0x2c] ss:$16 sps:$4 sm:$0xff]  }
   0xb   :  { %3062 = vmatprep.subr.bf16.mxu1 %v3580_v0  ;;  %720 = vmatpush1.bf16.msra.mxu0 %v3141_v29  ;;  %v3147_v31 = vld [vmem:[%s4671_s5 + $0x20] ss:$16 sps:$4 sm:$0xff]   ;;  %v3148_v32 = vld [vmem:[%s4671_s5 + $0x44] ss:$16 sps:$4 sm:$0xff]   ;;  %v3144_v3 = vld [vmem:[%s4671_s5 + $0x28] ss:$16 sps:$4 sm:$0xff]  }
   0xc   :  { %721 = vmatprep.subr.bf16.mxu0 %v3142_v30  ;;  %v3153_v33 = vld [vmem:[%s4671_s5 + $0x40] ss:$16 sps:$4 sm:$0xff]   ;;  %v3154_v34 = vld [vmem:[%s4671_s5 + $0x64] ss:$16 sps:$4 sm:$0xff]   ;;  %v3216_v27 = vld [vmem:[%s4671_s5 + $0x1a8] ss:$16 sps:$4 sm:$0xff]  }
   0xd   :  { %v3159_v35 = vld [vmem:[%s4671_s5 + $0x60] ss:$16 sps:$4 sm:$0xff]   ;;  %v3160_v36 = vld [vmem:[%s4671_s5 + $0x84] ss:$16 sps:$4 sm:$0xff]   ;;  %v3224_v30 = vld [vmem:[%s4671_s5 + $0x1cc] ss:$16 sps:$4 sm:$0xff]  }
   0xe   :  { %3063 = vmatpush3.bf16.msra.mxu1 %v3106_v4  ;;  %v3165_v37 = vld [vmem:[%s4671_s5 + $0x80] ss:$16 sps:$4 sm:$0xff]   ;;  %v3166_v38 = vld [vmem:[%s4671_s5 + $0xa4] ss:$16 sps:$4 sm:$0xff]   ;;  %v3152_v4 = vld [vmem:[%s4671_s5 + $0x4c] ss:$16 sps:$4 sm:$0xff]  }
   0xf   :  { %3064 = vmatprep.subr.bf16.mxu1 %v3580_v0  ;;  %722 = vmatpush1.bf16.msra.mxu0 %v3147_v31  ;;  %v3171_v39 = vld [vmem:[%s4671_s5 + $0xa0] ss:$16 sps:$4 sm:$0xff]   ;;  %v3172_v40 = vld [vmem:[%s4671_s5 + $0xc4] ss:$16 sps:$4 sm:$0xff]   ;;  %v3222_v31 = vld [vmem:[%s4671_s5 + $0x1c8] ss:$16 sps:$4 sm:$0xff]  }
  0x10   :  { %723 = vmatprep.subr.bf16.mxu0 %v3148_v32  ;;  %v3177_v41 = vld [vmem:[%s4671_s5 + $0xc0] ss:$16 sps:$4 sm:$0xff]   ;;  %v3178_v42 = vld [vmem:[%s4671_s5 + $0xe4] ss:$16 sps:$4 sm:$0xff]  }
  0x11   :  { %v3183_v43 = vld [vmem:[%s4671_s5 + $0xe0] ss:$16 sps:$4 sm:$0xff]   ;;  %v3184_v44 = vld [vmem:[%s4671_s5 + $0x104] ss:$16 sps:$4 sm:$0xff]  }
  0x12   :  { %3065 = vmatpush3.bf16.msra.mxu1 %v3107_v5  ;;  %v3189_v45 = vld [vmem:[%s4671_s5 + $0x100] ss:$16 sps:$4 sm:$0xff]   ;;  %v3190_v46 = vld [vmem:[%s4671_s5 + $0x124] ss:$16 sps:$4 sm:$0xff]   ;;  %v3150_v5 = vld [vmem:[%s4671_s5 + $0x48] ss:$16 sps:$4 sm:$0xff]  }
  0x13   :  { %3066 = vmatprep.subr.bf16.mxu1 %v3580_v0  ;;  %724 = vmatpush1.bf16.msra.mxu0 %v3153_v33  ;;  %v3195_v47 = vld [vmem:[%s4671_s5 + $0x120] ss:$16 sps:$4 sm:$0xff]   ;;  %v3196_v48 = vld [vmem:[%s4671_s5 + $0x144] ss:$16 sps:$4 sm:$0xff]  }
  0x14   :  { %725 = vmatprep.subr.bf16.mxu0 %v3154_v34  ;;  %v3201_v49 = vld [vmem:[%s4671_s5 + $0x140] ss:$16 sps:$4 sm:$0xff]   ;;  %v3202_v50 = vld [vmem:[%s4671_s5 + $0x164] ss:$16 sps:$4 sm:$0xff]   ;;  %v3230_v34 = vld [vmem:[%s4671_s5 + $0x1ec] ss:$16 sps:$4 sm:$0xff]  }
  0x15   :  { %v3207_v51 = vld [vmem:[%s4671_s5 + $0x160] ss:$16 sps:$4 sm:$0xff]   ;;  %v3208_v52 = vld [vmem:[%s4671_s5 + $0x184] ss:$16 sps:$4 sm:$0xff]  }
  0x16   :  { %3067 = vmatpush3.bf16.msra.mxu1 %v3108_v6  ;;  %v3213_v53 = vld [vmem:[%s4671_s5 + $0x180] ss:$16 sps:$4 sm:$0xff]   ;;  %v3214_v54 = vld [vmem:[%s4671_s5 + $0x1a4] ss:$16 sps:$4 sm:$0xff]   ;;  %v3158_v6 = vld [vmem:[%s4671_s5 + $0x6c] ss:$16 sps:$4 sm:$0xff]  }
  0x17   :  { %3068 = vmatprep.subr.bf16.mxu1 %v3580_v0  ;;  %726 = vmatpush1.bf16.msra.mxu0 %v3159_v35  ;;  %v2673_v55 = vld [vmem:[%s4672_s2] ss:$0 sm:$0xff]  ;;  %v3220_v29 = vld [vmem:[%s4671_s5 + $0x1c4] ss:$16 sps:$4 sm:$0xff]   ;;  %v3228_v35 = vld [vmem:[%s4671_s5 + $0x1e8] ss:$16 sps:$4 sm:$0xff]  }
  0x18   :  { %727 = vmatprep.subr.bf16.mxu0 %v3160_v36  ;;  %v3225_v32 = vld [vmem:[%s4671_s5 + $0x1c0] ss:$16 sps:$4 sm:$0xff]   ;;  %v3226_v33 = vld [vmem:[%s4671_s5 + $0x1e4] ss:$16 sps:$4 sm:$0xff]  }
  0x19   :  { %v3231_v36 = vld [vmem:[%s4671_s5 + $0x1e0] ss:$16 sps:$4 sm:$0xff]  }
  0x1a   :  { %3069 = vmatpush3.bf16.msra.mxu1 %v3109_v7  ;;  %v3156_v7 = vld [vmem:[%s4671_s5 + $0x68] ss:$16 sps:$4 sm:$0xff]  }
  0x1b   :  { %3070 = vmatprep.subr.bf16.mxu1 %v3580_v0  ;;  %728 = vmatpush1.bf16.msra.mxu0 %v3165_v37  ;;  %v3138_v0 = vld [vmem:[%s4671_s5 + $0x8] ss:$16 sps:$4 sm:$0xff]   ;;  %v3234_v37 = vld [vmem:[%s4673_s7 + $0x4] ss:$28 sps:$4 sm:$0xff]  }
  0x1c   :  { %729 = vmatprep.subr.bf16.mxu0 %v3166_v38  ;;  %v3237_v38 = vld [vmem:[%s4673_s7 + $0xc] ss:$28 sps:$4 sm:$0xff]  }
  0x1e   :  { %3071 = vmatpush3.bf16.msra.mxu1 %v3110_v8  ;;  %v3164_v8 = vld [vmem:[%s4671_s5 + $0x8c] ss:$16 sps:$4 sm:$0xff]  }
  0x1f   :  { %264 = vmatprep.subr.bf16.mxu1 %v3114_v9  ;;  %730 = vmatpush1.bf16.msra.mxu0 %v3171_v39  ;;  %v3162_v9 = vld [vmem:[%s4671_s5 + $0x88] ss:$16 sps:$4 sm:$0xff]   ;;  %v174_v39 = vlaneseq }
  0x20   :  { %731 = vmatprep.subr.bf16.mxu0 %v3172_v40 }
  0x21   :  { %3073 = vmatmul.mubr.bf16.vlgmr.msra.gmra.mrb[0].mxu1 %v3111_v10  ;;  %v3170_v10 = vld [vmem:[%s4671_s5 + $0xac] ss:$16 sps:$4 sm:$0xff]   ;;  %v3909_v40 = vshrl.u32 %v174_v39, 7  ;;  %v3303_v39 = vld [vmem:[%s4673_s7 + $0x274] ss:$28 sps:$4 sm:$0xff]  }
  0x22   :  { %265 = vmatpush1.bf16.msra.mxu1 %v3112_v11  ;;  %296 = vmatprep.mubr.bf16.mxu1 %v3582_v26  ;;  %v3168_v11 = vld [vmem:[%s4671_s5 + $0xa8] ss:$16 sps:$4 sm:$0xff]   ;;  %v3218_v26 = vld [vmem:[%s4671_s5 + $0x1ac] ss:$16 sps:$4 sm:$0xff]  }
  0x23   :  { %266 = vmatprep.subr.bf16.mxu1 %v3117_v12  ;;  %732 = vmatpush1.bf16.msra.mxu0 %v3177_v41  ;;  %v3176_v12 = vld [vmem:[%s4671_s5 + $0xcc] ss:$16 sps:$4 sm:$0xff]   ;;  %v3912_v41 = vsub.s32 0, %v3909_v40 }
  0x24   :  { %733 = vmatprep.subr.bf16.mxu0 %v3178_v42  ;;  %v172_v42 = vld [vmem:[%s4674_s4] sm:$0x3] }
  0x26   :  { %267 = vmatpush1.bf16.msra.mxu1 %v3115_v13  ;;  %v3174_v13 = vld [vmem:[%s4671_s5 + $0xc8] ss:$16 sps:$4 sm:$0xff]  }
  0x27   :  { %268 = vmatprep.subr.bf16.mxu1 %v3120_v14  ;;  %734 = vmatpush1.bf16.msra.mxu0 %v3183_v43  ;;  %v3182_v14 = vld [vmem:[%s4671_s5 + $0xec] ss:$16 sps:$4 sm:$0xff]   ;;  %v3918_v43 = vsub.s32 1, %v3909_v40 }
  0x28   :  { %735 = vmatprep.subr.bf16.mxu0 %v3184_v44  ;;  %v177_v44 = vrot.slane %v172_v42, %v3912_v41 }
  0x2a   :  { %269 = vmatpush1.bf16.msra.mxu1 %v3118_v15  ;;  %v3180_v15 = vld [vmem:[%s4671_s5 + $0xe8] ss:$16 sps:$4 sm:$0xff]  }
  0x2b   :  { %270 = vmatprep.subr.bf16.mxu1 %v3123_v16  ;;  %736 = vmatpush1.bf16.msra.mxu0 %v3189_v45  ;;  %v3188_v16 = vld [vmem:[%s4671_s5 + $0x10c] ss:$16 sps:$4 sm:$0xff]   ;;  %v181_v45 = vrot.slane %v172_v42, %v3918_v43  ;;  %v3298_v42 = vld [vmem:[%s4673_s7 + $0x268] ss:$28 sps:$4 sm:$0xff]  }
  0x2c   :  { %737 = vmatprep.subr.bf16.mxu0 %v3190_v46 }
  0x2e   :  { %271 = vmatpush1.bf16.msra.mxu1 %v3121_v17  ;;  %v3186_v17 = vld [vmem:[%s4671_s5 + $0x108] ss:$16 sps:$4 sm:$0xff]  }
  0x2f   :  { %272 = vmatprep.subr.bf16.mxu1 %v3126_v18  ;;  %738 = vmatpush1.bf16.msra.mxu0 %v3195_v47  ;;  %v3194_v18 = vld [vmem:[%s4671_s5 + $0x12c] ss:$16 sps:$4 sm:$0xff]  }
  0x30   :  { %739 = vmatprep.subr.bf16.mxu0 %v3196_v48 }
  0x32   :  { %273 = vmatpush1.bf16.msra.mxu1 %v3124_v19  ;;  %v3192_v19 = vld [vmem:[%s4671_s5 + $0x128] ss:$16 sps:$4 sm:$0xff]  }
  0x33   :  { %274 = vmatprep.subr.bf16.mxu1 %v3129_v20  ;;  %740 = vmatpush1.bf16.msra.mxu0 %v3201_v49  ;;  %v3200_v20 = vld [vmem:[%s4671_s5 + $0x14c] ss:$16 sps:$4 sm:$0xff]  }
  0x34   :  { %741 = vmatprep.subr.bf16.mxu0 %v3202_v50 }
  0x36   :  { %275 = vmatpush1.bf16.msra.mxu1 %v3127_v21  ;;  %v3198_v21 = vld [vmem:[%s4671_s5 + $0x148] ss:$16 sps:$4 sm:$0xff]  }
  0x37   :  { %276 = vmatprep.subr.bf16.mxu1 %v3132_v22  ;;  %742 = vmatpush1.bf16.msra.mxu0 %v3207_v51  ;;  %v3206_v22 = vld [vmem:[%s4671_s5 + $0x16c] ss:$16 sps:$4 sm:$0xff]  }
  0x38   :  { %743 = vmatprep.subr.bf16.mxu0 %v3208_v52 }
  0x3a   :  { %277 = vmatpush1.bf16.msra.mxu1 %v3130_v23  ;;  %v3204_v23 = vld [vmem:[%s4671_s5 + $0x168] ss:$16 sps:$4 sm:$0xff]  }
  0x3b   :  { %278 = vmatprep.subr.bf16.mxu1 %v3135_v24  ;;  %744 = vmatpush1.bf16.msra.mxu0 %v3213_v53  ;;  %v3212_v24 = vld [vmem:[%s4671_s5 + $0x18c] ss:$16 sps:$4 sm:$0xff]  }
  0x3c   :  { %745 = vmatprep.subr.bf16.mxu0 %v3214_v54 }
  0x3e   :  { %279 = vmatpush1.bf16.msra.mxu1 %v3133_v25  ;;  %v3210_v25 = vld [vmem:[%s4671_s5 + $0x188] ss:$16 sps:$4 sm:$0xff]  }
  0x3f   :  { %762 = vmatprep.subr.bf16.mxu1 %v3140_v28  ;;  %v3219_v28 = vld [vmem:[%s4671_s5 + $0x1a0] ss:$16 sps:$4 sm:$0xff]  }
  0x40   :  { %746 = vmatpush1.bf16.msra.mxu0 %v3219_v28  ;;  %v3280_v28 = vld [vmem:[%s4673_s7 + $0x1c0] ss:$28 sps:$4 sm:$0xff]  }
  0x41   :  { %747 = vmatprep.subr.bf16.mxu0 %v3220_v29  ;;  %v3283_v29 = vld [vmem:[%s4673_s7 + $0x1c8] ss:$28 sps:$4 sm:$0xff]  }
  0x44   :  { %748 = vmatpush1.bf16.msra.mxu0 %v3225_v32  ;;  %v3286_v32 = vld [vmem:[%s4673_s7 + $0x1f8] ss:$28 sps:$4 sm:$0xff]  }
  0x45   :  { %749 = vmatprep.subr.bf16.mxu0 %v3226_v33  ;;  %v3289_v33 = vld [vmem:[%s4673_s7 + $0x200] ss:$28 sps:$4 sm:$0xff]  }
  0x48   :  { %750 = vmatpush1.bf16.msra.mxu0 %v3231_v36  ;;  %v3292_v36 = vld [vmem:[%s4673_s7 + $0x230] ss:$28 sps:$4 sm:$0xff]  }
  0x49   :  { %2262 = vmatprep.subr.bf16.mxu0 %v3234_v37  ;;  %v3295_v37 = vld [vmem:[%s4673_s7 + $0x238] ss:$28 sps:$4 sm:$0xff]  }
  0xf4   :  { %v146_v56 = vpop.f32.mrb[0].mxu1 }
  0xf5   :  { %v147_v57 = vadd.f32 %v2673_v55, %v146_v56  ;;  %v3074_v58 = vpop.f32.mrb[1].mxu1 }
  0xf6   :  { %v149_v59 = vpop.f32.mrb[2].mxu1 }
  0xf7   :  { %v150_v60 = vadd.f32 %v2673_v55, %v149_v59  ;;  %v3075_v61 = vpop.f32.mrb[3].mxu1  ;;  %v153_v62 = vmax.f32 %v147_v57, 0.0 }
  0xf8   :  { %v3235_v61 = vld [vmem:[%s4673_s7 + $0x8] ss:$28 sps:$4 sm:$0xff]  }
  0xf9   :  { %v154_v63 = vmax.f32 %v150_v60, 0.0  ;;  %v3232_v60 = vld [vmem:[%s4673_s7] ss:$28 sps:$4 sm:$0xff]  }
  0xfb   :  { %v155_v1 = vpack.c.bf16 %v154_v63, %v153_v62  ;;  %v3240_v62 = vld [vmem:[%s4673_s7 + $0x3c] ss:$28 sps:$4 sm:$0xff]   ;;  %v3243_v63 = vld [vmem:[%s4673_s7 + $0x44] ss:$28 sps:$4 sm:$0xff]  }
  0xfd   :  { %297 = vmatmul.mubr.bf16.vlgmr.msra.gmra.mrb[4].mxu1 %v155_v1  ;;  %v3241_v1 = vld [vmem:[%s4673_s7 + $0x40] ss:$28 sps:$4 sm:$0xff]  }
  0xfe   :  { %763 = vmatpush1.bf16.msra.mxu1 %v3138_v0  ;;  %v3238_v0 = vld [vmem:[%s4673_s7 + $0x38] ss:$28 sps:$4 sm:$0xff]  }
  0xff   :  { %764 = vmatprep.subr.bf16.mxu1 %v3146_v2  ;;  %v3246_v2 = vld [vmem:[%s4673_s7 + $0x74] ss:$28 sps:$4 sm:$0xff]  }
 0x102   :  { %765 = vmatpush1.bf16.msra.mxu1 %v3144_v3  ;;  %v3249_v3 = vld [vmem:[%s4673_s7 + $0x7c] ss:$28 sps:$4 sm:$0xff]  }
 0x103   :  { %766 = vmatprep.subr.bf16.mxu1 %v3152_v4  ;;  %v3244_v4 = vld [vmem:[%s4673_s7 + $0x70] ss:$28 sps:$4 sm:$0xff]  }
 0x106   :  { %767 = vmatpush1.bf16.msra.mxu1 %v3150_v5  ;;  %v3247_v5 = vld [vmem:[%s4673_s7 + $0x78] ss:$28 sps:$4 sm:$0xff]  }
 0x107   :  { %768 = vmatprep.subr.bf16.mxu1 %v3158_v6  ;;  %v3252_v6 = vld [vmem:[%s4673_s7 + $0xac] ss:$28 sps:$4 sm:$0xff]  }
 0x10a   :  { %769 = vmatpush1.bf16.msra.mxu1 %v3156_v7  ;;  %v3255_v7 = vld [vmem:[%s4673_s7 + $0xb4] ss:$28 sps:$4 sm:$0xff]  }
 0x10b   :  { %770 = vmatprep.subr.bf16.mxu1 %v3164_v8  ;;  %v3250_v8 = vld [vmem:[%s4673_s7 + $0xa8] ss:$28 sps:$4 sm:$0xff]  }
 0x10e   :  { %771 = vmatpush1.bf16.msra.mxu1 %v3162_v9  ;;  %v3253_v9 = vld [vmem:[%s4673_s7 + $0xb0] ss:$28 sps:$4 sm:$0xff]  }
 0x10f   :  { %772 = vmatprep.subr.bf16.mxu1 %v3170_v10  ;;  %v3258_v10 = vld [vmem:[%s4673_s7 + $0xe4] ss:$28 sps:$4 sm:$0xff]  }
 0x112   :  { %773 = vmatpush1.bf16.msra.mxu1 %v3168_v11  ;;  %v3261_v11 = vld [vmem:[%s4673_s7 + $0xec] ss:$28 sps:$4 sm:$0xff]  }
 0x113   :  { %774 = vmatprep.subr.bf16.mxu1 %v3176_v12  ;;  %v3256_v12 = vld [vmem:[%s4673_s7 + $0xe0] ss:$28 sps:$4 sm:$0xff]  }
 0x116   :  { %775 = vmatpush1.bf16.msra.mxu1 %v3174_v13  ;;  %v3259_v13 = vld [vmem:[%s4673_s7 + $0xe8] ss:$28 sps:$4 sm:$0xff]  }
 0x117   :  { %776 = vmatprep.subr.bf16.mxu1 %v3182_v14  ;;  %v3264_v14 = vld [vmem:[%s4673_s7 + $0x11c] ss:$28 sps:$4 sm:$0xff]  }
 0x11a   :  { %777 = vmatpush1.bf16.msra.mxu1 %v3180_v15  ;;  %v3267_v15 = vld [vmem:[%s4673_s7 + $0x124] ss:$28 sps:$4 sm:$0xff]  }
 0x11b   :  { %778 = vmatprep.subr.bf16.mxu1 %v3188_v16  ;;  %v3262_v16 = vld [vmem:[%s4673_s7 + $0x118] ss:$28 sps:$4 sm:$0xff]  }
 0x11e   :  { %779 = vmatpush1.bf16.msra.mxu1 %v3186_v17  ;;  %v3265_v17 = vld [vmem:[%s4673_s7 + $0x120] ss:$28 sps:$4 sm:$0xff]  }
 0x11f   :  { %780 = vmatprep.subr.bf16.mxu1 %v3194_v18  ;;  %v3270_v18 = vld [vmem:[%s4673_s7 + $0x154] ss:$28 sps:$4 sm:$0xff]  }
 0x122   :  { %781 = vmatpush1.bf16.msra.mxu1 %v3192_v19  ;;  %v3273_v19 = vld [vmem:[%s4673_s7 + $0x15c] ss:$28 sps:$4 sm:$0xff]  }
 0x123   :  { %782 = vmatprep.subr.bf16.mxu1 %v3200_v20  ;;  %v3268_v20 = vld [vmem:[%s4673_s7 + $0x150] ss:$28 sps:$4 sm:$0xff]  }
 0x126   :  { %783 = vmatpush1.bf16.msra.mxu1 %v3198_v21  ;;  %v3271_v21 = vld [vmem:[%s4673_s7 + $0x158] ss:$28 sps:$4 sm:$0xff]  }
 0x127   :  { %784 = vmatprep.subr.bf16.mxu1 %v3206_v22  ;;  %v3276_v22 = vld [vmem:[%s4673_s7 + $0x18c] ss:$28 sps:$4 sm:$0xff]  }
 0x12a   :  { %785 = vmatpush1.bf16.msra.mxu1 %v3204_v23  ;;  %v3279_v23 = vld [vmem:[%s4673_s7 + $0x194] ss:$28 sps:$4 sm:$0xff]  }
 0x12b   :  { %786 = vmatprep.subr.bf16.mxu1 %v3212_v24  ;;  %v3274_v24 = vld [vmem:[%s4673_s7 + $0x188] ss:$28 sps:$4 sm:$0xff]  }
 0x12e   :  { %787 = vmatpush1.bf16.msra.mxu1 %v3210_v25  ;;  %v3277_v25 = vld [vmem:[%s4673_s7 + $0x190] ss:$28 sps:$4 sm:$0xff]  }
 0x12f   :  { %788 = vmatprep.subr.bf16.mxu1 %v3218_v26  ;;  %v3282_v26 = vld [vmem:[%s4673_s7 + $0x1c4] ss:$28 sps:$4 sm:$0xff]  }
 0x132   :  { %789 = vmatpush1.bf16.msra.mxu1 %v3216_v27  ;;  %v3285_v27 = vld [vmem:[%s4673_s7 + $0x1cc] ss:$28 sps:$4 sm:$0xff]  }
 0x133   :  { %790 = vmatprep.subr.bf16.mxu1 %v3224_v30  ;;  %v3288_v30 = vld [vmem:[%s4673_s7 + $0x1fc] ss:$28 sps:$4 sm:$0xff]  }
 0x136   :  { %791 = vmatpush1.bf16.msra.mxu1 %v3222_v31  ;;  %v3291_v31 = vld [vmem:[%s4673_s7 + $0x204] ss:$28 sps:$4 sm:$0xff]  }
 0x137   :  { %792 = vmatprep.subr.bf16.mxu1 %v3230_v34  ;;  %v3294_v34 = vld [vmem:[%s4673_s7 + $0x234] ss:$28 sps:$4 sm:$0xff]  }
 0x13a   :  { %793 = vmatpush1.bf16.msra.mxu1 %v3228_v35  ;;  %v3297_v35 = vld [vmem:[%s4673_s7 + $0x23c] ss:$28 sps:$4 sm:$0xff]  }
 0x13b   :  { %2348 = vmatprep.subr.bf16.mxu1 %v3237_v38  ;;  %v3300_v38 = vld [vmem:[%s4673_s7 + $0x26c] ss:$28 sps:$4 sm:$0xff]  }
 0x1d0   :  { %v298_v46 = vpop.f32.mrb[4].mxu1 }
 0x1d1   :  { %v299_v47 = vadd.f32 %v298_v46, %v177_v44  ;;  %v300_v48 = vpop.f32.mrb[5].mxu1  ;;  %v3309_v46 = vld [vmem:[%s4673_s7 + $0x2ac] ss:$28 sps:$4 sm:$0xff]  }
 0x1d2   :  { %v301_v49 = vadd.f32 %v300_v48, %v181_v45  ;;  %v302_v50 = vpop.f32.mrb[6].mxu1  ;;  %v3307_v48 = vld [vmem:[%s4673_s7 + $0x2a8] ss:$28 sps:$4 sm:$0xff]  }
 0x1d3   :  { %v303_v51 = vadd.f32 %v302_v50, %v177_v44  ;;  %v304_v52 = vpop.f32.mrb[7].mxu1  ;;  %v307_v54 = vmax.f32 %v299_v47, 0.0  ;;  %v3301_v44 = vld [vmem:[%s4673_s7 + $0x270] ss:$28 sps:$4 sm:$0xff]   ;;  %v3304_v47 = vld [vmem:[%s4673_s7 + $0x2a0] ss:$28 sps:$4 sm:$0xff]  }
 0x1d4   :  { %v305_v53 = vadd.f32 %v304_v52, %v181_v45  ;;  %v308_v56 = vmax.f32 %v301_v49, 0.0  ;;  %v3306_v45 = vld [vmem:[%s4673_s7 + $0x2a4] ss:$28 sps:$4 sm:$0xff]   ;;  %v3312_v49 = vld [vmem:[%s4673_s7 + $0x2dc] ss:$28 sps:$4 sm:$0xff]  }
 0x1d5   :  { %v309_v55 = vmax.f32 %v303_v51, 0.0  ;;  %v3315_v50 = vld [vmem:[%s4673_s7 + $0x2e4] ss:$28 sps:$4 sm:$0xff]   ;;  %v3310_v51 = vld [vmem:[%s4673_s7 + $0x2d8] ss:$28 sps:$4 sm:$0xff]  }
 0x1d6   :  { %v310_v57 = vmax.f32 %v305_v53, 0.0  ;;  %v3313_v52 = vld [vmem:[%s4673_s7 + $0x2e0] ss:$28 sps:$4 sm:$0xff]   ;;  %v3318_v53 = vld [vmem:[%s4673_s7 + $0x314] ss:$28 sps:$4 sm:$0xff]  }
 0x1d7   :  { %v311_v58 = vpack.c.bf16 %v309_v55, %v307_v54  ;;  %v3321_v54 = vld [vmem:[%s4673_s7 + $0x31c] ss:$28 sps:$4 sm:$0xff]   ;;  %v3316_v55 = vld [vmem:[%s4673_s7 + $0x310] ss:$28 sps:$4 sm:$0xff]  }
 0x1d8   :  { %v312_v59 = vpack.c.bf16 %v310_v57, %v308_v56  ;;  %v3319_v56 = vld [vmem:[%s4673_s7 + $0x318] ss:$28 sps:$4 sm:$0xff]   ;;  %v3324_v57 = vld [vmem:[%s4673_s7 + $0x34c] ss:$28 sps:$4 sm:$0xff]  }
 0x1da   :  { %751 = vmatprep.mubr.bf16.mxu0 %v312_v59  ;;  %794 = vmatprep.mubr.bf16.mxu1 %v312_v59  ;;  %v3322_v59 = vld [vmem:[%s4673_s7 + $0x348] ss:$28 sps:$4 sm:$0xff]  }
 0x1db   :  { %752 = vmatmul.mubr.bf16.vlgmr.msra.gmra.mrb[0].mxu0 %v311_v58  ;;  %795 = vmatmul.mubr.bf16.vlgmr.msra.gmra.mrb[8].mxu1 %v311_v58  ;;  %v3327_v58 = vld [vmem:[%s4673_s7 + $0x354] ss:$28 sps:$4 sm:$0xff]  }
 0x1dc   :  { %2263 = vmatpush1.bf16.msra.mxu0 %v3232_v60  ;;  %2349 = vmatpush1.bf16.msra.mxu1 %v3235_v61  ;;  %v3325_v60 = vld [vmem:[%s4673_s7 + $0x350] ss:$28 sps:$4 sm:$0xff]   ;;  %v3330_v61 = vld [vmem:[%s4673_s7 + $0x384] ss:$28 sps:$4 sm:$0xff]  }
 0x1dd   :  { %2264 = vmatprep.subr.bf16.mxu0 %v3240_v62  ;;  %2350 = vmatprep.subr.bf16.mxu1 %v3243_v63  ;;  %v3333_v62 = vld [vmem:[%s4673_s7 + $0x38c] ss:$28 sps:$4 sm:$0xff]   ;;  %v389_v63 = vsub.s32 2, %v3909_v40 }
 0x1e0   :  { %2265 = vmatpush1.bf16.msra.mxu0 %v3238_v0  ;;  %2351 = vmatpush1.bf16.msra.mxu1 %v3241_v1  ;;  %v377_v0 = vld [vmem:[%s4675_s6] sm:$0xf]  ;;  %v393_v1 = vsub.s32 3, %v3909_v40 }
 0x1e1   :  { %2266 = vmatprep.subr.bf16.mxu0 %v3246_v2  ;;  %2352 = vmatprep.subr.bf16.mxu1 %v3249_v3  ;;  %v382_v2 = vrot.slane %v377_v0, %v3912_v41  ;;  %v390_v3 = vrot.slane %v377_v0, %v389_v63 }
 0x1e4   :  { %2267 = vmatpush1.bf16.msra.mxu0 %v3244_v4  ;;  %2353 = vmatpush1.bf16.msra.mxu1 %v3247_v5  ;;  %v386_v4 = vrot.slane %v377_v0, %v3918_v43  ;;  %v394_v5 = vrot.slane %v377_v0, %v393_v1  ;;  %v3372_v0 = vld [vmem:[%s4673_s7 + $0x50c] ss:$28 sps:$4 sm:$0xff]  }
 0x1e5   :  { %2268 = vmatprep.subr.bf16.mxu0 %v3252_v6  ;;  %2354 = vmatprep.subr.bf16.mxu1 %v3255_v7 }
 0x1e8   :  { %2269 = vmatpush1.bf16.msra.mxu0 %v3250_v8  ;;  %2355 = vmatpush1.bf16.msra.mxu1 %v3253_v9 }
 0x1e9   :  { %2270 = vmatprep.subr.bf16.mxu0 %v3258_v10  ;;  %2356 = vmatprep.subr.bf16.mxu1 %v3261_v11 }
 0x1ec   :  { %2271 = vmatpush1.bf16.msra.mxu0 %v3256_v12  ;;  %2357 = vmatpush1.bf16.msra.mxu1 %v3259_v13 }
 0x1ed   :  { %2272 = vmatprep.subr.bf16.mxu0 %v3264_v14  ;;  %2358 = vmatprep.subr.bf16.mxu1 %v3267_v15 }
 0x1f0   :  { %2273 = vmatpush1.bf16.msra.mxu0 %v3262_v16  ;;  %2359 = vmatpush1.bf16.msra.mxu1 %v3265_v17 }
 0x1f1   :  { %2274 = vmatprep.subr.bf16.mxu0 %v3270_v18  ;;  %2360 = vmatprep.subr.bf16.mxu1 %v3273_v19 }
 0x1f4   :  { %2275 = vmatpush1.bf16.msra.mxu0 %v3268_v20  ;;  %2361 = vmatpush1.bf16.msra.mxu1 %v3271_v21 }
 0x1f5   :  { %2276 = vmatprep.subr.bf16.mxu0 %v3276_v22  ;;  %2362 = vmatprep.subr.bf16.mxu1 %v3279_v23 }
 0x1f8   :  { %2277 = vmatpush1.bf16.msra.mxu0 %v3274_v24  ;;  %2363 = vmatpush1.bf16.msra.mxu1 %v3277_v25 }
 0x1f9   :  { %2278 = vmatprep.subr.bf16.mxu0 %v3282_v26  ;;  %2364 = vmatprep.subr.bf16.mxu1 %v3285_v27 }
 0x1fc   :  { %2279 = vmatpush1.bf16.msra.mxu0 %v3280_v28  ;;  %2365 = vmatpush1.bf16.msra.mxu1 %v3283_v29 }
 0x1fd   :  { %2280 = vmatprep.subr.bf16.mxu0 %v3288_v30  ;;  %2366 = vmatprep.subr.bf16.mxu1 %v3291_v31 }
 0x200   :  { %2281 = vmatpush1.bf16.msra.mxu0 %v3286_v32  ;;  %2367 = vmatpush1.bf16.msra.mxu1 %v3289_v33 }
 0x201   :  { %2282 = vmatprep.subr.bf16.mxu0 %v3294_v34  ;;  %2368 = vmatprep.subr.bf16.mxu1 %v3297_v35  ;;  %v3328_v34 = vld [vmem:[%s4673_s7 + $0x380] ss:$28 sps:$4 sm:$0xff]   ;;  %v3331_v35 = vld [vmem:[%s4673_s7 + $0x388] ss:$28 sps:$4 sm:$0xff]  }
 0x204   :  { %2283 = vmatpush1.bf16.msra.mxu0 %v3292_v36  ;;  %2369 = vmatpush1.bf16.msra.mxu1 %v3295_v37  ;;  %v3336_v36 = vld [vmem:[%s4673_s7 + $0x3bc] ss:$28 sps:$4 sm:$0xff]   ;;  %v3339_v37 = vld [vmem:[%s4673_s7 + $0x3c4] ss:$28 sps:$4 sm:$0xff]  }
 0x205   :  { %2284 = vmatprep.subr.bf16.mxu0 %v3300_v38  ;;  %2370 = vmatprep.subr.bf16.mxu1 %v3303_v39  ;;  %v3334_v38 = vld [vmem:[%s4673_s7 + $0x3b8] ss:$28 sps:$4 sm:$0xff]   ;;  %v3337_v39 = vld [vmem:[%s4673_s7 + $0x3c0] ss:$28 sps:$4 sm:$0xff]  }
 0x208   :  { %2285 = vmatpush1.bf16.msra.mxu0 %v3298_v42  ;;  %2371 = vmatpush1.bf16.msra.mxu1 %v3301_v44  ;;  %v3342_v42 = vld [vmem:[%s4673_s7 + $0x3f4] ss:$28 sps:$4 sm:$0xff]   ;;  %v3345_v44 = vld [vmem:[%s4673_s7 + $0x3fc] ss:$28 sps:$4 sm:$0xff]  }
 0x209   :  { %2286 = vmatprep.subr.bf16.mxu0 %v3306_v45  ;;  %2372 = vmatprep.subr.bf16.mxu1 %v3309_v46  ;;  %v3340_v45 = vld [vmem:[%s4673_s7 + $0x3f0] ss:$28 sps:$4 sm:$0xff]   ;;  %v3343_v46 = vld [vmem:[%s4673_s7 + $0x3f8] ss:$28 sps:$4 sm:$0xff]  }
 0x20c   :  { %2287 = vmatpush1.bf16.msra.mxu0 %v3304_v47  ;;  %2373 = vmatpush1.bf16.msra.mxu1 %v3307_v48  ;;  %v3348_v47 = vld [vmem:[%s4673_s7 + $0x42c] ss:$28 sps:$4 sm:$0xff]   ;;  %v3351_v48 = vld [vmem:[%s4673_s7 + $0x434] ss:$28 sps:$4 sm:$0xff]  }
 0x20d   :  { %2288 = vmatprep.subr.bf16.mxu0 %v3312_v49  ;;  %2374 = vmatprep.subr.bf16.mxu1 %v3315_v50  ;;  %v3346_v49 = vld [vmem:[%s4673_s7 + $0x428] ss:$28 sps:$4 sm:$0xff]   ;;  %v3349_v50 = vld [vmem:[%s4673_s7 + $0x430] ss:$28 sps:$4 sm:$0xff]  }
 0x210   :  { %2289 = vmatpush1.bf16.msra.mxu0 %v3310_v51  ;;  %2375 = vmatpush1.bf16.msra.mxu1 %v3313_v52  ;;  %v3354_v51 = vld [vmem:[%s4673_s7 + $0x464] ss:$28 sps:$4 sm:$0xff]   ;;  %v3357_v52 = vld [vmem:[%s4673_s7 + $0x46c] ss:$28 sps:$4 sm:$0xff]  }
 0x211   :  { %2290 = vmatprep.subr.bf16.mxu0 %v3318_v53  ;;  %2376 = vmatprep.subr.bf16.mxu1 %v3321_v54  ;;  %v3352_v53 = vld [vmem:[%s4673_s7 + $0x460] ss:$28 sps:$4 sm:$0xff]   ;;  %v3355_v54 = vld [vmem:[%s4673_s7 + $0x468] ss:$28 sps:$4 sm:$0xff]  }
 0x214   :  { %2291 = vmatpush1.bf16.msra.mxu0 %v3316_v55  ;;  %2377 = vmatpush1.bf16.msra.mxu1 %v3319_v56  ;;  %v3360_v55 = vld [vmem:[%s4673_s7 + $0x49c] ss:$28 sps:$4 sm:$0xff]   ;;  %v3363_v56 = vld [vmem:[%s4673_s7 + $0x4a4] ss:$28 sps:$4 sm:$0xff]  }
 0x215   :  { %2292 = vmatprep.subr.bf16.mxu0 %v3324_v57  ;;  %2378 = vmatprep.subr.bf16.mxu1 %v3327_v58  ;;  %v3358_v57 = vld [vmem:[%s4673_s7 + $0x498] ss:$28 sps:$4 sm:$0xff]   ;;  %v3361_v58 = vld [vmem:[%s4673_s7 + $0x4a0] ss:$28 sps:$4 sm:$0xff]  }
 0x218   :  { %2293 = vmatpush1.bf16.msra.mxu0 %v3322_v59  ;;  %2379 = vmatpush1.bf16.msra.mxu1 %v3325_v60  ;;  %v3366_v59 = vld [vmem:[%s4673_s7 + $0x4d4] ss:$28 sps:$4 sm:$0xff]   ;;  %v3369_v60 = vld [vmem:[%s4673_s7 + $0x4dc] ss:$28 sps:$4 sm:$0xff]  }
 0x219   :  { %2305 = vmatprep.subr.bf16.mxu0 %v3330_v61  ;;  %2391 = vmatprep.subr.bf16.mxu1 %v3333_v62  ;;  %v3364_v61 = vld [vmem:[%s4673_s7 + $0x4d0] ss:$28 sps:$4 sm:$0xff]   ;;  %v3367_v62 = vld [vmem:[%s4673_s7 + $0x4d8] ss:$28 sps:$4 sm:$0xff]  }
 0x2ae   :  { %v753_v6 = vpop.f32.mrb[0].mxu0  ;;  %v796_v7 = vpop.f32.mrb[8].mxu1 }
 0x2af   :  { %v754_v8 = vadd.f32 %v753_v6, %v382_v2  ;;  %v797_v9 = vadd.f32 %v796_v7, %v390_v3  ;;  %v755_v10 = vpop.f32.mrb[1].mxu0  ;;  %v798_v11 = vpop.f32.mrb[9].mxu1  ;;  %v3381_v6 = vld [vmem:[%s4673_s7 + $0x54c] ss:$28 sps:$4 sm:$0xff]   ;;  %v3376_v7 = vld [vmem:[%s4673_s7 + $0x540] ss:$28 sps:$4 sm:$0xff]  }
 0x2b0   :  { %v756_v12 = vadd.f32 %v755_v10, %v386_v4  ;;  %v799_v13 = vadd.f32 %v798_v11, %v394_v5  ;;  %v757_v14 = vpop.f32.mrb[2].mxu0  ;;  %v800_v15 = vpop.f32.mrb[10].mxu1  ;;  %v3387_v10 = vld [vmem:[%s4673_s7 + $0x584] ss:$28 sps:$4 sm:$0xff]   ;;  %v3382_v11 = vld [vmem:[%s4673_s7 + $0x578] ss:$28 sps:$4 sm:$0xff]  }
 0x2b1   :  { %v758_v16 = vadd.f32 %v757_v14, %v382_v2  ;;  %v801_v17 = vadd.f32 %v800_v15, %v390_v3  ;;  %v759_v18 = vpop.f32.mrb[3].mxu0  ;;  %v802_v19 = vpop.f32.mrb[11].mxu1  ;;  %v805_v22 = vmax.f32 %v754_v8, 0.0  ;;  %v807_v23 = vmax.f32 %v797_v9, 0.0  ;;  %v3375_v2 = vld [vmem:[%s4673_s7 + $0x514] ss:$28 sps:$4 sm:$0xff]  }
 0x2b2   :  { %v760_v20 = vadd.f32 %v759_v18, %v386_v4  ;;  %v803_v21 = vadd.f32 %v802_v19, %v394_v5  ;;  %v806_v26 = vmax.f32 %v756_v12, 0.0  ;;  %v808_v27 = vmax.f32 %v799_v13, 0.0  ;;  %v3370_v3 = vld [vmem:[%s4673_s7 + $0x508] ss:$28 sps:$4 sm:$0xff]   ;;  %v3373_v4 = vld [vmem:[%s4673_s7 + $0x510] ss:$28 sps:$4 sm:$0xff]  }
 0x2b3   :  { %v809_v24 = vmax.f32 %v758_v16, 0.0  ;;  %v811_v25 = vmax.f32 %v801_v17, 0.0  ;;  %v3378_v5 = vld [vmem:[%s4673_s7 + $0x544] ss:$28 sps:$4 sm:$0xff]   ;;  %v3384_v9 = vld [vmem:[%s4673_s7 + $0x57c] ss:$28 sps:$4 sm:$0xff]  }
 0x2b4   :  { %v810_v28 = vmax.f32 %v760_v20, 0.0  ;;  %v812_v29 = vmax.f32 %v803_v21, 0.0  ;;  %v3379_v8 = vld [vmem:[%s4673_s7 + $0x548] ss:$28 sps:$4 sm:$0xff]   ;;  %v3385_v12 = vld [vmem:[%s4673_s7 + $0x580] ss:$28 sps:$4 sm:$0xff]  }
 0x2b5   :  { %v4125_v30 = vpack.c.bf16 %v809_v24, %v805_v22  ;;  %v4127_v31 = vpack.c.bf16 %v811_v25, %v807_v23  ;;  %v3390_v13 = vld [vmem:[%s4673_s7 + $0x5b4] ss:$28 sps:$4 sm:$0xff]   ;;  %v3393_v14 = vld [vmem:[%s4673_s7 + $0x5bc] ss:$28 sps:$4 sm:$0xff]   ;;  %v3396_v17 = vld [vmem:[%s4673_s7 + $0x5ec] ss:$28 sps:$4 sm:$0xff]  }
 0x2b6   :  { %v4129_v32 = vpack.c.bf16 %v810_v28, %v806_v26  ;;  %v4131_v33 = vpack.c.bf16 %v812_v29, %v808_v27  ;;  %v3388_v15 = vld [vmem:[%s4673_s7 + $0x5b0] ss:$28 sps:$4 sm:$0xff]   ;;  %v3391_v16 = vld [vmem:[%s4673_s7 + $0x5b8] ss:$28 sps:$4 sm:$0xff]   ;;  %v3394_v19 = vld [vmem:[%s4673_s7 + $0x5e8] ss:$28 sps:$4 sm:$0xff]  }
 0x2b7   :  { %v3399_v18 = vld [vmem:[%s4673_s7 + $0x5f4] ss:$28 sps:$4 sm:$0xff]   ;;  %v3402_v21 = vld [vmem:[%s4673_s7 + $0x624] ss:$28 sps:$4 sm:$0xff]   ;;  %v3405_v22 = vld [vmem:[%s4673_s7 + $0x62c] ss:$28 sps:$4 sm:$0xff]  }
 0x2b8   :  { %2294 = vmatprep.mubr.bf16.mxu0 %v4129_v32  ;;  %2380 = vmatprep.mubr.bf16.mxu1 %v4129_v32  ;;  %v3397_v20 = vld [vmem:[%s4673_s7 + $0x5f0] ss:$28 sps:$4 sm:$0xff]   ;;  %v3400_v23 = vld [vmem:[%s4673_s7 + $0x620] ss:$28 sps:$4 sm:$0xff]   ;;  %v3403_v24 = vld [vmem:[%s4673_s7 + $0x628] ss:$28 sps:$4 sm:$0xff]  }
 0x2b9   :  { %2295 = vmatmul.mubr.bf16.vlgmr.msra.gmra.mrb[4].mxu0 %v4125_v30  ;;  %2381 = vmatmul.mubr.bf16.vlgmr.msra.gmra.mrb[12].mxu1 %v4125_v30  ;;  %v3408_v25 = vld [vmem:[%s4673_s7 + $0x65c] ss:$28 sps:$4 sm:$0xff]   ;;  %v3411_v26 = vld [vmem:[%s4673_s7 + $0x664] ss:$28 sps:$4 sm:$0xff]   ;;  %v3414_v29 = vld [vmem:[%s4673_s7 + $0x694] ss:$28 sps:$4 sm:$0xff]  }
 0x2ba   :  { %2306 = vmatpush1.bf16.msra.mxu0 %v3328_v34  ;;  %2392 = vmatpush1.bf16.msra.mxu1 %v3331_v35  ;;  %v3406_v27 = vld [vmem:[%s4673_s7 + $0x658] ss:$28 sps:$4 sm:$0xff]   ;;  %v3409_v28 = vld [vmem:[%s4673_s7 + $0x660] ss:$28 sps:$4 sm:$0xff]   ;;  %v3412_v35 = vld [vmem:[%s4673_s7 + $0x690] ss:$28 sps:$4 sm:$0xff]  }
 0x2bb   :  { %2337 = vmatprep.mubr.bf16.mxu0 %v4131_v33  ;;  %2423 = vmatprep.mubr.bf16.mxu1 %v4131_v33  ;;  %v3417_v34 = vld [vmem:[%s4673_s7 + $0x69c] ss:$28 sps:$4 sm:$0xff]  }
 0x2bc   :  { %2307 = vmatprep.subr.bf16.mxu0 %v3336_v36  ;;  %2393 = vmatprep.subr.bf16.mxu1 %v3339_v37  ;;  %v3415_v36 = vld [vmem:[%s4673_s7 + $0x698] ss:$28 sps:$4 sm:$0xff]   ;;  %v3420_v37 = vld [vmem:[%s4673_s7 + $0x6cc] ss:$28 sps:$4 sm:$0xff]  }
 0x2be   :  { %2308 = vmatpush1.bf16.msra.mxu0 %v3334_v38  ;;  %2394 = vmatpush1.bf16.msra.mxu1 %v3337_v39  ;;  %v3423_v38 = vld [vmem:[%s4673_s7 + $0x6d4] ss:$28 sps:$4 sm:$0xff]   ;;  %v3418_v39 = vld [vmem:[%s4673_s7 + $0x6c8] ss:$28 sps:$4 sm:$0xff]  }
 0x2bf   :  { %2309 = vmatprep.subr.bf16.mxu0 %v3342_v42  ;;  %2395 = vmatprep.subr.bf16.mxu1 %v3345_v44  ;;  %v3421_v42 = vld [vmem:[%s4673_s7 + $0x6d0] ss:$28 sps:$4 sm:$0xff]  }
 0x2c0   :  { %v3426_v44 = vld [vmem:[%s4673_s7 + $0x14] ss:$28 sps:$4 sm:$0xff]  }
 0x2c2   :  { %2310 = vmatpush1.bf16.msra.mxu0 %v3340_v45  ;;  %2396 = vmatpush1.bf16.msra.mxu1 %v3343_v46  ;;  %v3427_v45 = vld [vmem:[%s4673_s7 + $0x1d8] ss:$28 sps:$4 sm:$0xff]   ;;  %v3424_v46 = vld [vmem:[%s4673_s7 + $0x10] ss:$28 sps:$4 sm:$0xff]  }
 0x2c3   :  { %2311 = vmatprep.subr.bf16.mxu0 %v3348_v47  ;;  %2397 = vmatprep.subr.bf16.mxu1 %v3351_v48  ;;  %v3428_v47 = vld [vmem:[%s4673_s7 + $0x18] ss:$28 sps:$4 sm:$0xff]   ;;  %v3431_v48 = vld [vmem:[%s4673_s7 + $0x4c] ss:$28 sps:$4 sm:$0xff]  }
 0x2c6   :  { %2312 = vmatpush1.bf16.msra.mxu0 %v3346_v49  ;;  %2398 = vmatpush1.bf16.msra.mxu1 %v3349_v50  ;;  %v3432_v49 = vld [vmem:[%s4673_s7 + $0x210] ss:$28 sps:$4 sm:$0xff]   ;;  %v3429_v50 = vld [vmem:[%s4673_s7 + $0x48] ss:$28 sps:$4 sm:$0xff]  }
 0x2c7   :  { %2313 = vmatprep.subr.bf16.mxu0 %v3354_v51  ;;  %2399 = vmatprep.subr.bf16.mxu1 %v3357_v52  ;;  %v3433_v51 = vld [vmem:[%s4673_s7 + $0x50] ss:$28 sps:$4 sm:$0xff]   ;;  %v3436_v52 = vld [vmem:[%s4673_s7 + $0x84] ss:$28 sps:$4 sm:$0xff]  }
 0x2ca   :  { %2314 = vmatpush1.bf16.msra.mxu0 %v3352_v53  ;;  %2400 = vmatpush1.bf16.msra.mxu1 %v3355_v54  ;;  %v3437_v53 = vld [vmem:[%s4673_s7 + $0x248] ss:$28 sps:$4 sm:$0xff]   ;;  %v3434_v54 = vld [vmem:[%s4673_s7 + $0x80] ss:$28 sps:$4 sm:$0xff]  }
 0x2cb   :  { %2315 = vmatprep.subr.bf16.mxu0 %v3360_v55  ;;  %2401 = vmatprep.subr.bf16.mxu1 %v3363_v56  ;;  %v3441_v55 = vld [vmem:[%s4673_s7 + $0xbc] ss:$28 sps:$4 sm:$0xff]  }
 0x2cc   :  { %v3442_v56 = vld [vmem:[%s4673_s7 + $0x280] ss:$28 sps:$4 sm:$0xff]  }
 0x2ce   :  { %2316 = vmatpush1.bf16.msra.mxu0 %v3358_v57  ;;  %2402 = vmatpush1.bf16.msra.mxu1 %v3361_v58  ;;  %v3439_v57 = vld [vmem:[%s4673_s7 + $0xb8] ss:$28 sps:$4 sm:$0xff]   ;;  %v3443_v58 = vld [vmem:[%s4673_s7 + $0xc0] ss:$28 sps:$4 sm:$0xff]  }
 0x2cf   :  { %2317 = vmatprep.subr.bf16.mxu0 %v3366_v59  ;;  %2403 = vmatprep.subr.bf16.mxu1 %v3369_v60  ;;  %v3446_v59 = vld [vmem:[%s4673_s7 + $0xf4] ss:$28 sps:$4 sm:$0xff]  }
 0x2d0   :  { %v3447_v60 = vld [vmem:[%s4673_s7 + $0x2b8] ss:$28 sps:$4 sm:$0xff]  }
 0x2d2   :  { %2318 = vmatpush1.bf16.msra.mxu0 %v3364_v61  ;;  %2404 = vmatpush1.bf16.msra.mxu1 %v3367_v62  ;;  %v3444_v61 = vld [vmem:[%s4673_s7 + $0xf0] ss:$28 sps:$4 sm:$0xff]   ;;  %v3448_v62 = vld [vmem:[%s4673_s7 + $0xf8] ss:$28 sps:$4 sm:$0xff]  }
 0x2d3   :  { %2319 = vmatprep.subr.bf16.mxu0 %v3372_v0  ;;  %2405 = vmatprep.subr.bf16.mxu1 %v3375_v2  ;;  %v3451_v0 = vld [vmem:[%s4673_s7 + $0x12c] ss:$28 sps:$4 sm:$0xff]  }
 0x2d4   :  { %v3452_v2 = vld [vmem:[%s4673_s7 + $0x2f0] ss:$28 sps:$4 sm:$0xff]  }
 0x2d6   :  { %2320 = vmatpush1.bf16.msra.mxu0 %v3370_v3  ;;  %2406 = vmatpush1.bf16.msra.mxu1 %v3373_v4  ;;  %v3449_v3 = vld [vmem:[%s4673_s7 + $0x128] ss:$28 sps:$4 sm:$0xff]   ;;  %v3453_v4 = vld [vmem:[%s4673_s7 + $0x130] ss:$28 sps:$4 sm:$0xff]  }
 0x2d7   :  { %2321 = vmatprep.subr.bf16.mxu0 %v3378_v5  ;;  %2407 = vmatprep.subr.bf16.mxu1 %v3381_v6  ;;  %v3456_v5 = vld [vmem:[%s4673_s7 + $0x164] ss:$28 sps:$4 sm:$0xff]  }
 0x2d8   :  { %v3457_v6 = vld [vmem:[%s4673_s7 + $0x328] ss:$28 sps:$4 sm:$0xff]  }
 0x2da   :  { %2322 = vmatpush1.bf16.msra.mxu0 %v3376_v7  ;;  %2408 = vmatpush1.bf16.msra.mxu1 %v3379_v8  ;;  %v3454_v7 = vld [vmem:[%s4673_s7 + $0x160] ss:$28 sps:$4 sm:$0xff]   ;;  %v3458_v8 = vld [vmem:[%s4673_s7 + $0x168] ss:$28 sps:$4 sm:$0xff]  }
 0x2db   :  { %2323 = vmatprep.subr.bf16.mxu0 %v3384_v9  ;;  %2409 = vmatprep.subr.bf16.mxu1 %v3387_v10  ;;  %v3461_v9 = vld [vmem:[%s4673_s7 + $0x19c] ss:$28 sps:$4 sm:$0xff]  }
 0x2dc   :  { %v3462_v10 = vld [vmem:[%s4673_s7 + $0x360] ss:$28 sps:$4 sm:$0xff]  }
 0x2de   :  { %2324 = vmatpush1.bf16.msra.mxu0 %v3382_v11  ;;  %2410 = vmatpush1.bf16.msra.mxu1 %v3385_v12  ;;  %v3459_v11 = vld [vmem:[%s4673_s7 + $0x198] ss:$28 sps:$4 sm:$0xff]   ;;  %v3463_v12 = vld [vmem:[%s4673_s7 + $0x1a0] ss:$28 sps:$4 sm:$0xff]  }
 0x2df   :  { %2325 = vmatprep.subr.bf16.mxu0 %v3390_v13  ;;  %2411 = vmatprep.subr.bf16.mxu1 %v3393_v14  ;;  %v3466_v13 = vld [vmem:[%s4673_s7 + $0x1d4] ss:$28 sps:$4 sm:$0xff]  }
 0x2e0   :  { %v3467_v14 = vld [vmem:[%s4673_s7 + $0x558] ss:$28 sps:$4 sm:$0xff]  }
 0x2e2   :  { %2326 = vmatpush1.bf16.msra.mxu0 %v3388_v15  ;;  %2412 = vmatpush1.bf16.msra.mxu1 %v3391_v16  ;;  %v3464_v15 = vld [vmem:[%s4673_s7 + $0x1d0] ss:$28 sps:$4 sm:$0xff]   ;;  %v3468_v16 = vld [vmem:[%s4673_s7 + $0x398] ss:$28 sps:$4 sm:$0xff]  }
 0x2e3   :  { %2327 = vmatprep.subr.bf16.mxu0 %v3396_v17  ;;  %2413 = vmatprep.subr.bf16.mxu1 %v3399_v18  ;;  %v3471_v17 = vld [vmem:[%s4673_s7 + $0x20c] ss:$28 sps:$4 sm:$0xff]  }
 0x2e4   :  { %v3472_v18 = vld [vmem:[%s4673_s7 + $0x590] ss:$28 sps:$4 sm:$0xff]  }
 0x2e6   :  { %2328 = vmatpush1.bf16.msra.mxu0 %v3394_v19  ;;  %2414 = vmatpush1.bf16.msra.mxu1 %v3397_v20  ;;  %v3469_v19 = vld [vmem:[%s4673_s7 + $0x208] ss:$28 sps:$4 sm:$0xff]   ;;  %v3473_v20 = vld [vmem:[%s4673_s7 + $0x3d0] ss:$28 sps:$4 sm:$0xff]  }
 0x2e7   :  { %2329 = vmatprep.subr.bf16.mxu0 %v3402_v21  ;;  %2415 = vmatprep.subr.bf16.mxu1 %v3405_v22  ;;  %v3476_v21 = vld [vmem:[%s4673_s7 + $0x244] ss:$28 sps:$4 sm:$0xff]  }
 0x2e8   :  { %v3477_v22 = vld [vmem:[%s4673_s7 + $0x5c8] ss:$28 sps:$4 sm:$0xff]  }
 0x2ea   :  { %2330 = vmatpush1.bf16.msra.mxu0 %v3400_v23  ;;  %2416 = vmatpush1.bf16.msra.mxu1 %v3403_v24  ;;  %v3474_v23 = vld [vmem:[%s4673_s7 + $0x240] ss:$28 sps:$4 sm:$0xff]   ;;  %v3478_v24 = vld [vmem:[%s4673_s7 + $0x408] ss:$28 sps:$4 sm:$0xff]  }
 0x2eb   :  { %2331 = vmatprep.subr.bf16.mxu0 %v3408_v25  ;;  %2417 = vmatprep.subr.bf16.mxu1 %v3411_v26  ;;  %v3481_v25 = vld [vmem:[%s4673_s7 + $0x27c] ss:$28 sps:$4 sm:$0xff]  }
 0x2ec   :  { %v3482_v26 = vld [vmem:[%s4673_s7 + $0x600] ss:$28 sps:$4 sm:$0xff]  }
 0x2ee   :  { %2332 = vmatpush1.bf16.msra.mxu0 %v3406_v27  ;;  %2418 = vmatpush1.bf16.msra.mxu1 %v3409_v28  ;;  %v3479_v27 = vld [vmem:[%s4673_s7 + $0x278] ss:$28 sps:$4 sm:$0xff]   ;;  %v3483_v28 = vld [vmem:[%s4673_s7 + $0x440] ss:$28 sps:$4 sm:$0xff]  }
 0x2ef   :  { %2333 = vmatprep.subr.bf16.mxu0 %v3414_v29  ;;  %2419 = vmatprep.subr.bf16.mxu1 %v3417_v34  ;;  %v3486_v29 = vld [vmem:[%s4673_s7 + $0x2b4] ss:$28 sps:$4 sm:$0xff]  }
 0x2f0   :  { %v3487_v34 = vld [vmem:[%s4673_s7 + $0x638] ss:$28 sps:$4 sm:$0xff]  }
 0x2f2   :  { %2334 = vmatpush1.bf16.msra.mxu0 %v3412_v35  ;;  %2420 = vmatpush1.bf16.msra.mxu1 %v3415_v36  ;;  %v3484_v35 = vld [vmem:[%s4673_s7 + $0x2b0] ss:$28 sps:$4 sm:$0xff]   ;;  %v3488_v36 = vld [vmem:[%s4673_s7 + $0x478] ss:$28 sps:$4 sm:$0xff]  }
 0x2f3   :  { %2335 = vmatprep.subr.bf16.mxu0 %v3420_v37  ;;  %2421 = vmatprep.subr.bf16.mxu1 %v3423_v38  ;;  %v3491_v37 = vld [vmem:[%s4673_s7 + $0x2ec] ss:$28 sps:$4 sm:$0xff]  }
 0x2f4   :  { %v3492_v38 = vld [vmem:[%s4673_s7 + $0x670] ss:$28 sps:$4 sm:$0xff]  }
 0x2f6   :  { %2336 = vmatpush1.bf16.msra.mxu0 %v3418_v39  ;;  %2422 = vmatpush1.bf16.msra.mxu1 %v3421_v42  ;;  %v3489_v39 = vld [vmem:[%s4673_s7 + $0x2e8] ss:$28 sps:$4 sm:$0xff]   ;;  %v3493_v42 = vld [vmem:[%s4673_s7 + $0x4b0] ss:$28 sps:$4 sm:$0xff]  }
 0x2f7   :  { %2434 = vmatprep.subr.bf16.mxu0 %v3426_v44  ;;  %3012 = vmatprep.subr.bf16.mxu1 %v3427_v45  ;;  %v3496_v44 = vld [vmem:[%s4673_s7 + $0x324] ss:$28 sps:$4 sm:$0xff]  }
 0x2f8   :  { %v3497_v45 = vld [vmem:[%s4673_s7 + $0x6a8] ss:$28 sps:$4 sm:$0xff]  }
 0x2f9   :  { %2338 = vmatmul.mubr.bf16.vlgmr.msra.gmra.mrb[4].mxu0 %v4127_v31  ;;  %2424 = vmatmul.mubr.bf16.vlgmr.msra.gmra.mrb[12].mxu1 %v4127_v31 }
 0x2fa   :  { %2435 = vmatpush1.bf16.msra.mxu0 %v3424_v46  ;;  %2466 = vmatprep.mubr.bf16.mxu0 %v4129_v32  ;;  %v3494_v46 = vld [vmem:[%s4673_s7 + $0x320] ss:$28 sps:$4 sm:$0xff]  }
 0x2fb   :  { %3013 = vmatpush3.bf16.msra.mxu1 %v3428_v47  ;;  %2552 = vmatprep.mubr.bf16.mxu1 %v4129_v32  ;;  %v3438_v32 = vld [vmem:[%s4673_s7 + $0x88] ss:$28 sps:$4 sm:$0xff]  }
 0x2fc   :  { %2436 = vmatprep.subr.bf16.mxu0 %v3431_v48  ;;  %3014 = vmatprep.subr.bf16.mxu1 %v3432_v49  ;;  %v3498_v47 = vld [vmem:[%s4673_s7 + $0x4e8] ss:$28 sps:$4 sm:$0xff]   ;;  %v3501_v48 = vld [vmem:[%s4673_s7 + $0x35c] ss:$28 sps:$4 sm:$0xff]  }
 0x2fd   :  { %v3502_v49 = vld [vmem:[%s4673_s7 + $0x6e0] ss:$28 sps:$4 sm:$0xff]  }
 0x2fe   :  { %2437 = vmatpush1.bf16.msra.mxu0 %v3429_v50  ;;  %v3499_v50 = vld [vmem:[%s4673_s7 + $0x358] ss:$28 sps:$4 sm:$0xff]  }
 0x2ff   :  { %3015 = vmatpush3.bf16.msra.mxu1 %v3433_v51  ;;  %2438 = vmatprep.subr.bf16.mxu0 %v3436_v52  ;;  %v3503_v51 = vld [vmem:[%s4673_s7 + $0x520] ss:$28 sps:$4 sm:$0xff]   ;;  %v3506_v52 = vld [vmem:[%s4673_s7 + $0x394] ss:$28 sps:$4 sm:$0xff]  }
 0x300   :  { %3016 = vmatprep.subr.bf16.mxu1 %v3437_v53  ;;  %v3504_v53 = vld [vmem:[%s4673_s7 + $0x390] ss:$28 sps:$4 sm:$0xff]  }
 0x302   :  { %2439 = vmatpush1.bf16.msra.mxu0 %v3434_v54  ;;  %v3509_v54 = vld [vmem:[%s4673_s7 + $0x3cc] ss:$28 sps:$4 sm:$0xff]  }
 0x303   :  { %3017 = vmatpush3.bf16.msra.mxu1 %v3438_v32  ;;  %2440 = vmatprep.subr.bf16.mxu0 %v3441_v55  ;;  %v3507_v32 = vld [vmem:[%s4673_s7 + $0x3c8] ss:$28 sps:$4 sm:$0xff]  }
 0x304   :  { %3018 = vmatprep.subr.bf16.mxu1 %v3442_v56  ;;  %v3512_v55 = vld [vmem:[%s4673_s7 + $0x404] ss:$28 sps:$4 sm:$0xff]  }
 0x305   :  { %v3510_v56 = vld [vmem:[%s4673_s7 + $0x400] ss:$28 sps:$4 sm:$0xff]  }
 0x306   :  { %2441 = vmatpush1.bf16.msra.mxu0 %v3439_v57  ;;  %v3518_v57 = vld [vmem:[%s4673_s7 + $0x474] ss:$28 sps:$4 sm:$0xff]  }
 0x307   :  { %3019 = vmatpush3.bf16.msra.mxu1 %v3443_v58  ;;  %2442 = vmatprep.subr.bf16.mxu0 %v3446_v59  ;;  %v3516_v58 = vld [vmem:[%s4673_s7 + $0x470] ss:$28 sps:$4 sm:$0xff]  }
 0x308   :  { %3020 = vmatprep.subr.bf16.mxu1 %v3447_v60  ;;  %v3521_v59 = vld [vmem:[%s4673_s7 + $0x4ac] ss:$28 sps:$4 sm:$0xff]  }
 0x309   :  { %v3519_v60 = vld [vmem:[%s4673_s7 + $0x4a8] ss:$28 sps:$4 sm:$0xff]  }
 0x30a   :  { %2443 = vmatpush1.bf16.msra.mxu0 %v3444_v61  ;;  %v3524_v61 = vld [vmem:[%s4673_s7 + $0x4e4] ss:$28 sps:$4 sm:$0xff]  }
 0x30b   :  { %3021 = vmatpush3.bf16.msra.mxu1 %v3448_v62  ;;  %2444 = vmatprep.subr.bf16.mxu0 %v3451_v0  ;;  %v3522_v62 = vld [vmem:[%s4673_s7 + $0x4e0] ss:$28 sps:$4 sm:$0xff]  }
 0x30c   :  { %3022 = vmatprep.subr.bf16.mxu1 %v3452_v2  ;;  %v3527_v0 = vld [vmem:[%s4673_s7 + $0x51c] ss:$28 sps:$4 sm:$0xff]  }
 0x30d   :  { %v3525_v2 = vld [vmem:[%s4673_s7 + $0x518] ss:$28 sps:$4 sm:$0xff]  }
 0x30e   :  { %2445 = vmatpush1.bf16.msra.mxu0 %v3449_v3  ;;  %v3530_v3 = vld [vmem:[%s4673_s7 + $0x554] ss:$28 sps:$4 sm:$0xff]  }
 0x30f   :  { %3023 = vmatpush3.bf16.msra.mxu1 %v3453_v4  ;;  %2446 = vmatprep.subr.bf16.mxu0 %v3456_v5  ;;  %v3528_v4 = vld [vmem:[%s4673_s7 + $0x550] ss:$28 sps:$4 sm:$0xff]  }
 0x310   :  { %3024 = vmatprep.subr.bf16.mxu1 %v3457_v6  ;;  %v3533_v5 = vld [vmem:[%s4673_s7 + $0x58c] ss:$28 sps:$4 sm:$0xff]  }
 0x311   :  { %v3531_v6 = vld [vmem:[%s4673_s7 + $0x588] ss:$28 sps:$4 sm:$0xff]  }
 0x312   :  { %2447 = vmatpush1.bf16.msra.mxu0 %v3454_v7  ;;  %v3536_v7 = vld [vmem:[%s4673_s7 + $0x5c4] ss:$28 sps:$4 sm:$0xff]  }
 0x313   :  { %3025 = vmatpush3.bf16.msra.mxu1 %v3458_v8  ;;  %2448 = vmatprep.subr.bf16.mxu0 %v3461_v9  ;;  %v3534_v8 = vld [vmem:[%s4673_s7 + $0x5c0] ss:$28 sps:$4 sm:$0xff]  }
 0x314   :  { %3026 = vmatprep.subr.bf16.mxu1 %v3462_v10  ;;  %v3539_v9 = vld [vmem:[%s4673_s7 + $0x5fc] ss:$28 sps:$4 sm:$0xff]  }
 0x315   :  { %v3537_v10 = vld [vmem:[%s4673_s7 + $0x5f8] ss:$28 sps:$4 sm:$0xff]  }
 0x316   :  { %2449 = vmatpush1.bf16.msra.mxu0 %v3459_v11  ;;  %v3542_v11 = vld [vmem:[%s4673_s7 + $0x634] ss:$28 sps:$4 sm:$0xff]  }
 0x317   :  { %3027 = vmatpush3.bf16.msra.mxu1 %v3463_v12  ;;  %2450 = vmatprep.subr.bf16.mxu0 %v3466_v13  ;;  %v3540_v12 = vld [vmem:[%s4673_s7 + $0x630] ss:$28 sps:$4 sm:$0xff]  }
 0x318   :  { %3034 = vmatprep.subr.bf16.mxu1 %v3467_v14  ;;  %v3545_v13 = vld [vmem:[%s4673_s7 + $0x66c] ss:$28 sps:$4 sm:$0xff]  }
 0x319   :  { %v3543_v14 = vld [vmem:[%s4673_s7 + $0x668] ss:$28 sps:$4 sm:$0xff]  }
 0x31a   :  { %2553 = vmatmul.mubr.bf16.vlgmr.msra.gmra.mrb[16].mxu1 %v4125_v30  ;;  %2451 = vmatpush1.bf16.msra.mxu0 %v3464_v15  ;;  %v3548_v15 = vld [vmem:[%s4673_s7 + $0x6a4] ss:$28 sps:$4 sm:$0xff]  }
 0x31b   :  { %3035 = vmatpush3.bf16.msra.mxu1 %v3468_v16  ;;  %2593 = vmatprep.mubr.bf16.mxu1 %v4131_v33  ;;  %v3546_v16 = vld [vmem:[%s4673_s7 + $0x6a0] ss:$28 sps:$4 sm:$0xff]  }
 0x31c   :  { %2452 = vmatprep.subr.bf16.mxu0 %v3471_v17  ;;  %3036 = vmatprep.subr.bf16.mxu1 %v3472_v18  ;;  %v3551_v17 = vld [vmem:[%s4673_s7 + $0x6dc] ss:$28 sps:$4 sm:$0xff]  }
 0x31d   :  { %v3549_v18 = vld [vmem:[%s4673_s7 + $0x6d8] ss:$28 sps:$4 sm:$0xff]  }
 0x31e   :  { %2453 = vmatpush1.bf16.msra.mxu0 %v3469_v19  ;;  %v4626_v19 = vld [vmem:[%s4676_s8] sm:$0x7f] }
 0x31f   :  { %3037 = vmatpush3.bf16.msra.mxu1 %v3473_v20  ;;  %2454 = vmatprep.subr.bf16.mxu0 %v3476_v21  ;;  %v1078_v20 = vrot.slane %v4626_v19, %v3912_v41  ;;  %v1086_v21 = vrot.slane %v4626_v19, %v389_v63 }
 0x320   :  { %3038 = vmatprep.subr.bf16.mxu1 %v3477_v22  ;;  %v1082_v22 = vrot.slane %v4626_v19, %v3918_v43 }
 0x322   :  { %2455 = vmatpush1.bf16.msra.mxu0 %v3474_v23  ;;  %v1090_v23 = vrot.slane %v4626_v19, %v393_v1 }
 0x323   :  { %3039 = vmatpush3.bf16.msra.mxu1 %v3478_v24  ;;  %2456 = vmatprep.subr.bf16.mxu0 %v3481_v25 }
 0x324   :  { %3040 = vmatprep.subr.bf16.mxu1 %v3482_v26 }
 0x326   :  { %2457 = vmatpush1.bf16.msra.mxu0 %v3479_v27 }
 0x327   :  { %3041 = vmatpush3.bf16.msra.mxu1 %v3483_v28  ;;  %2458 = vmatprep.subr.bf16.mxu0 %v3486_v29 }
 0x328   :  { %3042 = vmatprep.subr.bf16.mxu1 %v3487_v34 }
 0x32a   :  { %2459 = vmatpush1.bf16.msra.mxu0 %v3484_v35 }
 0x32b   :  { %3043 = vmatpush3.bf16.msra.mxu1 %v3488_v36  ;;  %2460 = vmatprep.subr.bf16.mxu0 %v3491_v37 }
 0x32c   :  { %3044 = vmatprep.subr.bf16.mxu1 %v3492_v38 }
 0x32e   :  { %2461 = vmatpush1.bf16.msra.mxu0 %v3489_v39 }
 0x32f   :  { %3045 = vmatpush3.bf16.msra.mxu1 %v3493_v42  ;;  %2462 = vmatprep.subr.bf16.mxu0 %v3496_v44 }
 0x330   :  { %3046 = vmatprep.subr.bf16.mxu1 %v3497_v45 }
 0x332   :  { %2463 = vmatpush1.bf16.msra.mxu0 %v3494_v46 }
 0x333   :  { %3047 = vmatpush3.bf16.msra.mxu1 %v3498_v47  ;;  %2464 = vmatprep.subr.bf16.mxu0 %v3501_v48 }
 0x334   :  { %3048 = vmatprep.subr.bf16.mxu1 %v3502_v49 }
 0x336   :  { %2465 = vmatpush1.bf16.msra.mxu0 %v3499_v50 }
 0x337   :  { %3049 = vmatpush3.bf16.msra.mxu1 %v3503_v51  ;;  %2477 = vmatprep.subr.bf16.mxu0 %v3506_v52 }
 0x339   :  { %2467 = vmatmul.mubr.bf16.vlgmr.msra.gmra.mrb[8].mxu0 %v4125_v30  ;;  %v3515_v30 = vld [vmem:[%s4673_s7 + $0x43c] ss:$28 sps:$4 sm:$0xff]  }
 0x33a   :  { %2594 = vmatmul.mubr.bf16.vlgmr.msra.gmra.mrb[20].mxu1 %v4127_v31  ;;  %2478 = vmatpush1.bf16.msra.mxu0 %v3504_v53 }
 0x33b   :  { %2509 = vmatprep.mubr.bf16.mxu0 %v4131_v33  ;;  %2479 = vmatprep.subr.bf16.mxu0 %v3509_v54  ;;  %v3513_v33 = vld [vmem:[%s4673_s7 + $0x438] ss:$28 sps:$4 sm:$0xff]  }
 0x33e   :  { %2480 = vmatpush1.bf16.msra.mxu0 %v3507_v32 }
 0x33f   :  { %2481 = vmatprep.subr.bf16.mxu0 %v3512_v55 }
 0x342   :  { %2482 = vmatpush1.bf16.msra.mxu0 %v3510_v56 }
 0x343   :  { %2483 = vmatprep.subr.bf16.mxu0 %v3515_v30 }
 0x346   :  { %2484 = vmatpush1.bf16.msra.mxu0 %v3513_v33 }
 0x347   :  { %2485 = vmatprep.subr.bf16.mxu0 %v3518_v57  ;;  %v1101_v57 = vsub.s32 6, %v3909_v40 }
 0x34a   :  { %2486 = vmatpush1.bf16.msra.mxu0 %v3516_v58  ;;  %v1102_v58 = vrot.slane %v4626_v19, %v1101_v57 }
 0x34b   :  { %2487 = vmatprep.subr.bf16.mxu0 %v3521_v59 }
 0x34e   :  { %2488 = vmatpush1.bf16.msra.mxu0 %v3519_v60 }
 0x34f   :  { %2489 = vmatprep.subr.bf16.mxu0 %v3524_v61 }
 0x352   :  { %2490 = vmatpush1.bf16.msra.mxu0 %v3522_v62 }
 0x353   :  { %2491 = vmatprep.subr.bf16.mxu0 %v3527_v0 }
 0x356   :  { %2492 = vmatpush1.bf16.msra.mxu0 %v3525_v2 }
 0x357   :  { %2493 = vmatprep.subr.bf16.mxu0 %v3530_v3 }
 0x35a   :  { %2494 = vmatpush1.bf16.msra.mxu0 %v3528_v4 }
 0x35b   :  { %2495 = vmatprep.subr.bf16.mxu0 %v3533_v5 }
 0x35e   :  { %2496 = vmatpush1.bf16.msra.mxu0 %v3531_v6 }
 0x35f   :  { %2497 = vmatprep.subr.bf16.mxu0 %v3536_v7 }
 0x362   :  { %2498 = vmatpush1.bf16.msra.mxu0 %v3534_v8 }
 0x363   :  { %2499 = vmatprep.subr.bf16.mxu0 %v3539_v9 }
 0x366   :  { %2500 = vmatpush1.bf16.msra.mxu0 %v3537_v10 }
 0x367   :  { %2501 = vmatprep.subr.bf16.mxu0 %v3542_v11  ;;  %v1093_v11 = vsub.s32 4, %v3909_v40 }
 0x36a   :  { %2502 = vmatpush1.bf16.msra.mxu0 %v3540_v12  ;;  %v1097_v12 = vsub.s32 5, %v3909_v40 }
 0x36b   :  { %2503 = vmatprep.subr.bf16.mxu0 %v3545_v13  ;;  %v1094_v13 = vrot.slane %v4626_v19, %v1093_v11 }
 0x36e   :  { %2504 = vmatpush1.bf16.msra.mxu0 %v3543_v14  ;;  %v1098_v14 = vrot.slane %v4626_v19, %v1097_v12 }
 0x36f   :  { %2505 = vmatprep.subr.bf16.mxu0 %v3548_v15 }
 0x372   :  { %2506 = vmatpush1.bf16.msra.mxu0 %v3546_v16 }
 0x373   :  { %2507 = vmatprep.subr.bf16.mxu0 %v3551_v17 }
 0x376   :  { %2508 = vmatpush1.bf16.msra.mxu0 %v3549_v18 }
 0x379   :  { %2510 = vmatmul.mubr.bf16.vlgmr.msra.gmra.mrb[8].mxu0 %v4127_v31 }
 0x3cc   :  { %v2339_v31 = vpop.f32.mrb[4].mxu0  ;;  %v2425_v24 = vpop.f32.mrb[12].mxu1 }
 0x3cd   :  { %v3076_v25 = vadd.f32 %v2339_v31, %v1078_v20  ;;  %v3080_v26 = vadd.f32 %v2425_v24, %v1086_v21  ;;  %v2341_v27 = vpop.f32.mrb[5].mxu0  ;;  %v2427_v28 = vpop.f32.mrb[13].mxu1 }
 0x3ce   :  { %v3077_v29 = vadd.f32 %v2341_v27, %v1082_v22  ;;  %v3081_v34 = vadd.f32 %v2427_v28, %v1090_v23  ;;  %v2343_v41 = vpop.f32.mrb[6].mxu0  ;;  %v2429_v35 = vpop.f32.mrb[14].mxu1 }
 0x3cf   :  { %3552 = vtanh.f32 %v3076_v25  ;;  %v3078_v36 = vadd.f32 %v2343_v41, %v1078_v20  ;;  %v2345_v63 = vpop.f32.mrb[7].mxu0  ;;  %v2431_v37 = vpop.f32.mrb[15].mxu1  ;;  %v3082_v43 = vadd.f32 %v2429_v35, %v1086_v21 }
 0x3d0   :  { %3554 = vtanh.f32 %v3080_v26  ;;  %v3079_v38 = vadd.f32 %v2345_v63, %v1082_v22  ;;  %v3083_v1 = vadd.f32 %v2431_v37, %v1090_v23 }
 0x3d1   :  { %3556 = vtanh.f32 %v3077_v29 }
 0x3d2   :  { %3558 = vtanh.f32 %v3081_v34 }
 0x3d3   :  { %3560 = vtanh.f32 %v3078_v36 }
 0x3d4   :  { %3562 = vtanh.f32 %v3082_v43 }
 0x3d5   :  { %3564 = vtanh.f32 %v3079_v38 }
 0x3d6   :  { %3566 = vtanh.f32 %v3083_v1 }
 0x3d9   :  { %v3553_v39 = vpop.eup %3552 }
 0x3da   :  { %v3555_v42 = vpop.eup %3554 }
 0x3db   :  { %v3557_v44 = vpop.eup %3556 }
 0x3dc   :  { %v3559_v45 = vpop.eup %3558  ;;  %v2995_v46 = vpack.c.bf16 %v3557_v44, %v3553_v39 }
 0x3dd   :  { %v3561_v47 = vpop.eup %3560  ;;  %v2996_v48 = vpack.c.bf16 %v3559_v45, %v3555_v42 }
 0x3de   :  { %v3563_v49 = vpop.eup %3562  ;;  %2660 = vst [vmem:[%s4677_s9] sm:$0xff] %v2995_v46 }
 0x3df   :  { %v3565_v50 = vpop.eup %3564  ;;  %2661 = vst [vmem:[%s4677_s9 + $0x8] sm:$0xff] %v2996_v48 }
 0x3e0   :  { %v3567_v51 = vpop.eup %3566  ;;  %v2999_v52 = vpack.c.bf16 %v3565_v50, %v3561_v47 }
 0x3e1   :  { %v3000_v53 = vpack.c.bf16 %v3567_v51, %v3563_v49 }
 0x3e2   :  { %2665 = vst [vmem:[%s4677_s9 + $0x1c] sm:$0xff] %v2999_v52 }
 0x3e3   :  { %2666 = vst [vmem:[%s4677_s9 + $0x24] sm:$0xff] %v3000_v53 }
 0x3ed   :  { %v3028_v54 = vpop.f32.mrb[16].mxu1 }
 0x3ee   :  { %v3029_v32 = vpop.f32.mrb[17].mxu1 }
 0x3ef   :  { %v3030_v55 = vadd.f32 %v3029_v32, %v3028_v54  ;;  %v3031_v56 = vpop.f32.mrb[18].mxu1 }
 0x3f0   :  { %v3032_v30 = vpop.f32.mrb[19].mxu1 }
 0x3f1   :  { %v3033_v33 = vadd.f32 %v3032_v30, %v3031_v56  ;;  %v2555_v61 = vadd.f32 %v3030_v55, %v1102_v58 }
 0x3f3   :  { %v2558_v3 = vadd.f32 %v3033_v33, %v1102_v58 }
 0x40d   :  { %v3050_v59 = vpop.f32.mrb[20].mxu1 }
 0x40e   :  { %v3051_v60 = vpop.f32.mrb[21].mxu1 }
 0x40f   :  { %v3052_v62 = vadd.f32 %v3051_v60, %v3050_v59  ;;  %v3053_v0 = vpop.f32.mrb[22].mxu1 }
 0x410   :  { %v3054_v2 = vpop.f32.mrb[23].mxu1 }
 0x411   :  { %v2596_v4 = vadd.f32 %v3052_v62, %v2555_v61  ;;  %v3055_v5 = vadd.f32 %v3054_v2, %v3053_v0 }
 0x413   :  { %3568 = vtanh.f32 %v2596_v4  ;;  %v2599_v6 = vadd.f32 %v3055_v5, %v2558_v3 }
 0x415   :  { %3570 = vtanh.f32 %v2599_v6 }
 0x41d   :  { %v3569_v7 = vpop.eup %3568 }
 0x41e   :  { %v2998_v8 = vpack.c.bf16 %v3569_v7, %v3569_v7 }
 0x41f   :  { %v3571_v9 = vpop.eup %3570 }
 0x420   :  { %2664 = vst.msk [vmem:[%s4677_s9 + $0x18] sm:$0xf] %vm2663_vm1, %v2998_v8  ;;  %v3002_v10 = vpack.c.bf16 %v3571_v9, %v3571_v9 }
 0x422   :  { %2668 = vst.msk [vmem:[%s4677_s9 + $0x34] sm:$0xf] %vm2663_vm1, %v3002_v10 }
 0x44c   :  { %v2511_v15 = vpop.f32.mrb[8].mxu0 }
 0x44d   :  { %v3084_v16 = vadd.f32 %v2511_v15, %v1094_v13  ;;  %v2513_v17 = vpop.f32.mrb[9].mxu0 }
 0x44e   :  { %v3085_v18 = vadd.f32 %v2513_v17, %v1098_v14  ;;  %v2515_v20 = vpop.f32.mrb[10].mxu0 }
 0x44f   :  { %3572 = vtanh.f32 %v3084_v16  ;;  %v3086_v21 = vadd.f32 %v2515_v20, %v1094_v13  ;;  %v2517_v22 = vpop.f32.mrb[11].mxu0 }
 0x450   :  { %3574 = vtanh.f32 %v3085_v18  ;;  %v3087_v23 = vadd.f32 %v2517_v22, %v1098_v14 }
 0x451   :  { %3576 = vtanh.f32 %v3086_v21 }
 0x452   :  { %3578 = vtanh.f32 %v3087_v23 }
 0x459   :  { %v3573_v31 = vpop.eup %3572 }
 0x45a   :  { %v3575_v24 = vpop.eup %3574 }
 0x45b   :  { %v3577_v25 = vpop.eup %3576  ;;  %v2997_v40 = vpack.c.bf16 %v3575_v24, %v3573_v31 }
 0x45c   :  { %v3579_v26 = vpop.eup %3578 }
 0x45d   :  { %2662 = vst [vmem:[%s4677_s9 + $0x10] sm:$0xff] %v2997_v40  ;;  %v3001_v19 = vpack.c.bf16 %v3579_v26, %v3577_v25 }
 0x45f   :  { %2667 = vst [vmem:[%s4677_s9 + $0x2c] sm:$0xff] %v3001_v19 }

</bundles_post_ra>
